<compile_context>
chip_gen: v5e
topology: v5e:2x2
jax: 0.10.0
libtpu: 0.0.40
codegen_flags: <defaults>
</compile_context>

<pallas_src>
import jax
import jax.numpy as jnp
from jax.experimental import pallas as pl
from jax.experimental.pallas import tpu as pltpu


# ----------------------------------------------------------------------------
# Config (small, but structurally identical to SigLIP-ViT)
# ----------------------------------------------------------------------------
IMAGE_SIZE = 16
PATCH_SIZE = 8
CHANNELS = 3
HIDDEN = 32
HEADS = 4
HEAD_DIM = HIDDEN // HEADS
INTERMEDIATE = 64
LAYERS = 2
LN_EPS = 1e-6
NUM_PATCHES = (IMAGE_SIZE // PATCH_SIZE) ** 2  # 4


# ----------------------------------------------------------------------------
# In-kernel helpers (f32 math on the VPU/EUP)
# ----------------------------------------------------------------------------
def _gelu_tanh(x):
    # gelu_pytorch_tanh
    c = jnp.float32(0.7978845608028654)  # sqrt(2/pi)
    return 0.5 * x * (1.0 + jnp.tanh(c * (x + 0.044715 * x * x * x)))


def _layernorm(x, g, b):
    mu = jnp.mean(x, axis=-1, keepdims=True)
    var = jnp.mean((x - mu) ** 2, axis=-1, keepdims=True)
    return (x - mu) * jax.lax.rsqrt(var + LN_EPS) * g + b


# ----------------------------------------------------------------------------
# Fused tower kernel: one grid step == one image; everything stays in VMEM.
# ----------------------------------------------------------------------------
def _tower_kernel(x_ref, pos_ref, pw_ref, pb_ref,
                  ln1g_ref, ln1b_ref, wqkv_ref, bqkv_ref, wo_ref, bo_ref,
                  ln2g_ref, ln2b_ref, fc1w_ref, fc1b_ref, fc2w_ref, fc2b_ref,
                  postg_ref, postb_ref, o_ref, attn_scratch):
    x = x_ref[0].astype(jnp.float32)                       # [S, C*P*P]

    # --- patch embedding (strided conv as im2col matmul) + position embedding
    h = jnp.dot(x, pw_ref[...], preferred_element_type=jnp.float32)
    h = h + pb_ref[...] + pos_ref[...]                      # [S, D]

    for li in range(LAYERS):                                # static unroll
        # ---------------- self-attention block ----------------
        res = h
        y = _layernorm(h, ln1g_ref[li], ln1b_ref[li])

        # fused QKV projection; 1/sqrt(Dh) already folded into the Q columns.
        qkv = jnp.dot(y, wqkv_ref[li], preferred_element_type=jnp.float32)
        qkv = qkv + bqkv_ref[li]                            # [S, 3D]
        q = qkv[:, 0 * HIDDEN:1 * HIDDEN]
        k = qkv[:, 1 * HIDDEN:2 * HIDDEN]
        v = qkv[:, 2 * HIDDEN:3 * HIDDEN]

        for hd in range(HEADS):                             # static unroll
            c0 = hd * HEAD_DIM
            qh = q[:, c0:c0 + HEAD_DIM]
            kh = k[:, c0:c0 + HEAD_DIM]
            vh = v[:, c0:c0 + HEAD_DIM]
            # QK^T without an explicit transpose: contract last axes of both.
            s = jax.lax.dot_general(qh, kh, (((1,), (1,)), ((), ())),
                                    preferred_element_type=jnp.float32)
            m = jnp.max(s, axis=-1, keepdims=True)
            p = jnp.exp(s - m)
            p = p * pl.reciprocal(jnp.sum(p, axis=-1, keepdims=True),
                                  approx=True)
            attn_scratch[:, c0:c0 + HEAD_DIM] = jnp.dot(
                p, vh, preferred_element_type=jnp.float32)

        o = jnp.dot(attn_scratch[...], wo_ref[li],
                    preferred_element_type=jnp.float32) + bo_ref[li]
        h = res + o

        # ---------------- MLP block ----------------
        res = h
        y = _layernorm(h, ln2g_ref[li], ln2b_ref[li])
        y = jnp.dot(y, fc1w_ref[li], preferred_element_type=jnp.float32)
        y = _gelu_tanh(y + fc1b_ref[li])
        y = jnp.dot(y, fc2w_ref[li], preferred_element_type=jnp.float32)
        h = res + (y + fc2b_ref[li])

    # --- post layernorm -> last_hidden_state (select_feature='patch')
    h = _layernorm(h, postg_ref[...], postb_ref[...])
    o_ref[0] = h.astype(o_ref.dtype)
    # TODO(synk): select_feature='cls_patch' (pooler_output via
    # SiglipMultiheadAttentionPoolingHead) is not implemented; the module's
    # default select_feature='patch' is covered.


# ----------------------------------------------------------------------------
# Wrapper
# ----------------------------------------------------------------------------
def siglip_vision_tower_forward(images, kparams):
    """images: [B, C, H, W] (NCHW, like the PyTorch conv input)."""
    B, C, H, W = images.shape
    P = PATCH_SIZE
    nh, nw = H // P, W // P
    S = nh * nw
    assert S == NUM_PATCHES and C == CHANNELS
    Cpp = C * P * P

    # Host glue: strided conv expressed as patch flatten (im2col) with
    # (c, ph, pw) ordering to match the flattened Conv2d weight.
    x = images.reshape(B, C, nh, P, nw, P)
    x = x.transpose(0, 2, 4, 1, 3, 5).reshape(B, S, Cpp)

    inputs = (
        x,
        kparams["pos_emb"],
        kparams["patch_w"], kparams["patch_b"],
        kparams["ln1_g"], kparams["ln1_b"],
        kparams["wqkv"], kparams["bqkv"],
        kparams["wo"], kparams["bo"],
        kparams["ln2_g"], kparams["ln2_b"],
        kparams["fc1_w"], kparams["fc1_b"],
        kparams["fc2_w"], kparams["fc2_b"],
        kparams["post_ln_g"], kparams["post_ln_b"],
    )

    def replicated(a):  # full-array block, same block for every grid step
        nd = a.ndim
        return pl.BlockSpec(a.shape, lambda b, nd=nd: (0,) * nd)

    in_specs = [pl.BlockSpec((1, S, Cpp), lambda b: (b, 0, 0))]
    in_specs += [replicated(a) for a in inputs[1:]]

    # Advisory cost estimate for the single fused custom call.
    flops_per_img = 2 * S * (
        Cpp * HIDDEN
        + LAYERS * (3 * HIDDEN * HIDDEN            # fused QKV
                    + HIDDEN * HIDDEN              # out proj
                    + 2 * HIDDEN * INTERMEDIATE    # MLP
                    + 2 * S * HIDDEN))             # QK^T + PV
    bytes_params = sum(int(a.size) * 4 for a in inputs[1:])
    cost = pl.CostEstimate(
        flops=B * flops_per_img,
        transcendentals=B * LAYERS * (HEADS * S * S + S * INTERMEDIATE),
        bytes_accessed=int(x.size) * 4 + bytes_params + B * S * HIDDEN * 4)

    return pl.pallas_call(
        _tower_kernel,
        out_shape=jax.ShapeDtypeStruct((B, S, HIDDEN), images.dtype),
        grid=(B,),
        in_specs=in_specs,
        out_specs=pl.BlockSpec((1, S, HIDDEN), lambda b: (b, 0, 0)),
        scratch_shapes=[pltpu.VMEM((S, HIDDEN), jnp.float32)],
        compiler_params=pltpu.CompilerParams(
            dimension_semantics=("parallel",)),   # v7x: shard images over 2 TCs
        cost_estimate=cost,
    )(*inputs)


# ----------------------------------------------------------------------------
# Parameter init (PyTorch-style layout) + fused/stacked prep for the kernel
# ----------------------------------------------------------------------------
def init_params(key):
    def nrm(k, shape, scale=0.02):
        return scale * jax.random.normal(k, shape, jnp.float32)

    keys = jax.random.split(key, 4 + LAYERS)
    params = {
        # Conv2d(C, D, kernel=P, stride=P) weight flattened to [C*P*P, D]
        # with (c, ph, pw) ordering to match the NCHW patch flatten.
        "patch_w": nrm(keys[0], (CHANNELS * PATCH_SIZE * PATCH_SIZE, HIDDEN)),
        "patch_b": jnp.zeros((HIDDEN,), jnp.float32),
        "pos_emb": nrm(keys[1], (NUM_PATCHES, HIDDEN)),
        "post_ln_g": jnp.ones((HIDDEN,), jnp.float32),
        "post_ln_b": jnp.zeros((HIDDEN,), jnp.float32),
        "layers": [],
    }
    for li in range(LAYERS):
        lk = jax.random.split(keys[4 + li], 6)
        params["layers"].append({
            "ln1_g": jnp.ones((HIDDEN,), jnp.float32),
            "ln1_b": jnp.zeros((HIDDEN,), jnp.float32),
            "wq": nrm(lk[0], (HIDDEN, HIDDEN)), "bq": jnp.zeros((HIDDEN,), jnp.float32),
            "wk": nrm(lk[1], (HIDDEN, HIDDEN)), "bk": jnp.zeros((HIDDEN,), jnp.float32),
            "wv": nrm(lk[2], (HIDDEN, HIDDEN)), "bv": jnp.zeros((HIDDEN,), jnp.float32),
            "wo": nrm(lk[3], (HIDDEN, HIDDEN)), "bo": jnp.zeros((HIDDEN,), jnp.float32),
            "ln2_g": jnp.ones((HIDDEN,), jnp.float32),
            "ln2_b": jnp.zeros((HIDDEN,), jnp.float32),
            "fc1_w": nrm(lk[4], (HIDDEN, INTERMEDIATE)),
            "fc1_b": jnp.zeros((INTERMEDIATE,), jnp.float32),
            "fc2_w": nrm(lk[5], (INTERMEDIATE, HIDDEN)),
            "fc2_b": jnp.zeros((HIDDEN,), jnp.float32),
        })
    return params


def prepare_params(params):
    """Stack per-layer params along a leading L axis, fuse QKV and fold in the
    1/sqrt(head_dim) attention scale (done once, off the hot path)."""
    scale = HEAD_DIM ** -0.5
    layers = params["layers"]

    def stack(fn):
        return jnp.stack([fn(lp) for lp in layers], axis=0)

    return {
        "patch_w": params["patch_w"],
        "patch_b": params["patch_b"].reshape(1, HIDDEN),
        "pos_emb": params["pos_emb"],                                   # [S, D]
        "post_ln_g": params["post_ln_g"].reshape(1, HIDDEN),
        "post_ln_b": params["post_ln_b"].reshape(1, HIDDEN),
        "ln1_g": stack(lambda lp: lp["ln1_g"].reshape(1, HIDDEN)),
        "ln1_b": stack(lambda lp: lp["ln1_b"].reshape(1, HIDDEN)),
        "wqkv": stack(lambda lp: jnp.concatenate(
            [lp["wq"] * scale, lp["wk"], lp["wv"]], axis=1)),           # [L, D, 3D]
        "bqkv": stack(lambda lp: jnp.concatenate(
            [lp["bq"] * scale, lp["bk"], lp["bv"]]).reshape(1, 3 * HIDDEN)),
        "wo": stack(lambda lp: lp["wo"]),
        "bo": stack(lambda lp: lp["bo"].reshape(1, HIDDEN)),
        "ln2_g": stack(lambda lp: lp["ln2_g"].reshape(1, HIDDEN)),
        "ln2_b": stack(lambda lp: lp["ln2_b"].reshape(1, HIDDEN)),
        "fc1_w": stack(lambda lp: lp["fc1_w"]),
        "fc1_b": stack(lambda lp: lp["fc1_b"].reshape(1, INTERMEDIATE)),
        "fc2_w": stack(lambda lp: lp["fc2_w"]),
        "fc2_b": stack(lambda lp: lp["fc2_b"].reshape(1, HIDDEN)),
    }


# ----------------------------------------------------------------------------
# Pure-JAX reference (PyTorch semantics) for correctness checking
# ----------------------------------------------------------------------------
def reference_forward(images, params):
    B, C, H, W = images.shape
    P = PATCH_SIZE
    nh, nw = H // P, W // P
    S = nh * nw
    x = images.reshape(B, C, nh, P, nw, P).transpose(0, 2, 4, 1, 3, 5)
    x = x.reshape(B * S, C * P * P)
    h = x @ params["patch_w"] + params["patch_b"]
    h = (h.reshape(B, S, HIDDEN) + params["pos_emb"][None]).reshape(B * S, HIDDEN)

    def ln(x, g, b):
        mu = x.mean(-1, keepdims=True)
        var = ((x - mu) ** 2).mean(-1, keepdims=True)
        return (x - mu) * jax.lax.rsqrt(var + LN_EPS) * g + b

    def gelu_tanh(x):
        c = jnp.sqrt(2.0 / jnp.pi)
        return 0.5 * x * (1.0 + jnp.tanh(c * (x + 0.044715 * x ** 3)))

    scale = HEAD_DIM ** -0.5
    for lp in params["layers"]:
        r = h
        y = ln(h, lp["ln1_g"], lp["ln1_b"])
        q = (y @ lp["wq"] + lp["bq"]).reshape(B, S, HEADS, HEAD_DIM).transpose(0, 2, 1, 3)
        k = (y @ lp["wk"] + lp["bk"]).reshape(B, S, HEADS, HEAD_DIM).transpose(0, 2, 1, 3)
        v = (y @ lp["wv"] + lp["bv"]).reshape(B, S, HEADS, HEAD_DIM).transpose(0, 2, 1, 3)
        s = jnp.einsum("bhqd,bhkd->bhqk", q * scale, k)
        p = jax.nn.softmax(s, axis=-1)
        o = jnp.einsum("bhqk,bhkd->bhqd", p, v).transpose(0, 2, 1, 3).reshape(B * S, HIDDEN)
        h = r + (o @ lp["wo"] + lp["bo"])
        r = h
        y = ln(h, lp["ln2_g"], lp["ln2_b"])
        y = gelu_tanh(y @ lp["fc1_w"] + lp["fc1_b"]) @ lp["fc2_w"] + lp["fc2_b"]
        h = r + y
    h = ln(h, params["post_ln_g"], params["post_ln_b"])
    return h.reshape(B, S, HIDDEN).astype(images.dtype)


if __name__ == "__main__":
    key = jax.random.PRNGKey(0)
    pkey, xkey = jax.random.split(key)
    params = init_params(pkey)
    kparams = prepare_params(params)
    images = jax.random.normal(xkey, (2, CHANNELS, IMAGE_SIZE, IMAGE_SIZE), jnp.float32)

    out = siglip_vision_tower_forward(images, kparams)
    out = jax.block_until_ready(out)

    ref = reference_forward(images, params)
    assert out.shape == (2, NUM_PATCHES, HIDDEN), out.shape
    # Tolerance loosened slightly (2e-3) for the approx (EUP vrcp) softmax
    # reciprocal; accumulation is f32 throughout.
    max_err = float(jnp.abs(out - ref).max())
    assert jnp.allclose(out, ref, atol=2e-3, rtol=2e-3), max_err

    print("KERNEL_OK")
</pallas_src>

<mosaic_0001>
module attributes {stable_mosaic.version = 11 : i64} {
  func.func @_tower_kernel(%arg0: i32, %arg1: memref<1x4x192xf32, #tpu.memory_space<vmem>>, %arg2: memref<4x32xf32, #tpu.memory_space<vmem>>, %arg3: memref<192x32xf32, #tpu.memory_space<vmem>>, %arg4: memref<1x32xf32, #tpu.memory_space<vmem>>, %arg5: memref<2x1x32xf32, #tpu.memory_space<vmem>>, %arg6: memref<2x1x32xf32, #tpu.memory_space<vmem>>, %arg7: memref<2x32x96xf32, #tpu.memory_space<vmem>>, %arg8: memref<2x1x96xf32, #tpu.memory_space<vmem>>, %arg9: memref<2x32x32xf32, #tpu.memory_space<vmem>>, %arg10: memref<2x1x32xf32, #tpu.memory_space<vmem>>, %arg11: memref<2x1x32xf32, #tpu.memory_space<vmem>>, %arg12: memref<2x1x32xf32, #tpu.memory_space<vmem>>, %arg13: memref<2x32x64xf32, #tpu.memory_space<vmem>>, %arg14: memref<2x1x64xf32, #tpu.memory_space<vmem>>, %arg15: memref<2x64x32xf32, #tpu.memory_space<vmem>>, %arg16: memref<2x1x32xf32, #tpu.memory_space<vmem>>, %arg17: memref<1x32xf32, #tpu.memory_space<vmem>>, %arg18: memref<1x32xf32, #tpu.memory_space<vmem>>, %arg19: memref<1x4x32xf32, #tpu.memory_space<vmem>>, %arg20: memref<4x32xf32, #tpu.memory_space<vmem>>) attributes {dimension_semantics = [#tpu.dimension_semantics<parallel>], iteration_bounds = array<i64: 2>, scalar_prefetch = 0 : i64, scratch_operands = 1 : i64, tpu.core_type = #tpu.core_type<tc>, window_params = [{transform_indices = @transform_0, window_bounds = array<i64: 1, 4, 192>}, {pipeline_mode = #tpu.pipeline_mode<synchronous>, transform_indices = @transform_1, window_bounds = array<i64: 4, 32>}, {pipeline_mode = #tpu.pipeline_mode<synchronous>, transform_indices = @transform_2, window_bounds = array<i64: 192, 32>}, {pipeline_mode = #tpu.pipeline_mode<synchronous>, transform_indices = @transform_3, window_bounds = array<i64: 1, 32>}, {pipeline_mode = #tpu.pipeline_mode<synchronous>, transform_indices = @transform_4, window_bounds = array<i64: 2, 1, 32>}, {pipeline_mode = #tpu.pipeline_mode<synchronous>, transform_indices = @transform_5, window_bounds = array<i64: 2, 1, 32>}, {pipeline_mode = #tpu.pipeline_mode<synchronous>, transform_indices = @transform_6, window_bounds = array<i64: 2, 32, 96>}, {pipeline_mode = #tpu.pipeline_mode<synchronous>, transform_indices = @transform_7, window_bounds = array<i64: 2, 1, 96>}, {pipeline_mode = #tpu.pipeline_mode<synchronous>, transform_indices = @transform_8, window_bounds = array<i64: 2, 32, 32>}, {pipeline_mode = #tpu.pipeline_mode<synchronous>, transform_indices = @transform_9, window_bounds = array<i64: 2, 1, 32>}, {pipeline_mode = #tpu.pipeline_mode<synchronous>, transform_indices = @transform_10, window_bounds = array<i64: 2, 1, 32>}, {pipeline_mode = #tpu.pipeline_mode<synchronous>, transform_indices = @transform_11, window_bounds = array<i64: 2, 1, 32>}, {pipeline_mode = #tpu.pipeline_mode<synchronous>, transform_indices = @transform_12, window_bounds = array<i64: 2, 32, 64>}, {pipeline_mode = #tpu.pipeline_mode<synchronous>, transform_indices = @transform_13, window_bounds = array<i64: 2, 1, 64>}, {pipeline_mode = #tpu.pipeline_mode<synchronous>, transform_indices = @transform_14, window_bounds = array<i64: 2, 64, 32>}, {pipeline_mode = #tpu.pipeline_mode<synchronous>, transform_indices = @transform_15, window_bounds = array<i64: 2, 1, 32>}, {pipeline_mode = #tpu.pipeline_mode<synchronous>, transform_indices = @transform_16, window_bounds = array<i64: 1, 32>}, {pipeline_mode = #tpu.pipeline_mode<synchronous>, transform_indices = @transform_17, window_bounds = array<i64: 1, 32>}, {transform_indices = @transform_18, window_bounds = array<i64: 1, 4, 32>}]} {
    %c0 = arith.constant 0 : index
    %c0_0 = arith.constant 0 : index
    %c0_1 = arith.constant 0 : index
    %0 = vector.load %arg1[%c0, %c0_0, %c0_1] : memref<1x4x192xf32, #tpu.memory_space<vmem>>, vector<1x4x192xf32>
    %1 = vector.shape_cast %0 : vector<1x4x192xf32> to vector<4x192xf32>
    %c0_2 = arith.constant 0 : index
    %c0_3 = arith.constant 0 : index
    %2 = vector.load %arg3[%c0_2, %c0_3] : memref<192x32xf32, #tpu.memory_space<vmem>>, vector<192x32xf32>
    %cst = arith.constant dense<0.000000e+00> : vector<4x32xf32>
    %3 = tpu.matmul %1, %2, %cst {dimension_numbers = #tpu.dot_dimension_numbers<[1], [0], [0], [1], [0, 0, 1, 1], [], []>} : vector<4x192xf32>, vector<192x32xf32>, vector<4x32xf32> -> vector<4x32xf32>
    %c0_4 = arith.constant 0 : index
    %c0_5 = arith.constant 0 : index
    %4 = vector.load %arg4[%c0_4, %c0_5] : memref<1x32xf32, #tpu.memory_space<vmem>>, vector<1x32xf32>
    %5 = vector.broadcast %4 : vector<1x32xf32> to vector<4x32xf32>
    %6 = arith.addf %3, %5 : vector<4x32xf32>
    %c0_6 = arith.constant 0 : index
    %c0_7 = arith.constant 0 : index
    %7 = vector.load %arg2[%c0_6, %c0_7] : memref<4x32xf32, #tpu.memory_space<vmem>>, vector<4x32xf32>
    %8 = arith.addf %6, %7 : vector<4x32xf32>
    %c0_8 = arith.constant 0 : index
    %c0_9 = arith.constant 0 : index
    %c0_10 = arith.constant 0 : index
    %9 = vector.load %arg5[%c0_8, %c0_9, %c0_10] : memref<2x1x32xf32, #tpu.memory_space<vmem>>, vector<1x1x32xf32>
    %10 = vector.shape_cast %9 : vector<1x1x32xf32> to vector<1x32xf32>
    %c0_11 = arith.constant 0 : index
    %c0_12 = arith.constant 0 : index
    %c0_13 = arith.constant 0 : index
    %11 = vector.load %arg6[%c0_11, %c0_12, %c0_13] : memref<2x1x32xf32, #tpu.memory_space<vmem>>, vector<1x1x32xf32>
    %12 = vector.shape_cast %11 : vector<1x1x32xf32> to vector<1x32xf32>
    %cst_14 = arith.constant dense<0.000000e+00> : vector<4xf32>
    %13 = vector.multi_reduction <add>, %8, %cst_14 [1] : vector<4x32xf32> to vector<4xf32>
    %14 = vector.shape_cast %13 : vector<4xf32> to vector<4x1xf32>
    %cst_15 = arith.constant 3.200000e+01 : f32
    %15 = vector.broadcast %cst_15 : f32 to vector<4x1xf32>
    %16 = arith.divf %14, %15 : vector<4x1xf32>
    %17 = vector.broadcast %16 : vector<4x1xf32> to vector<4x32xf32>
    %18 = arith.subf %8, %17 : vector<4x32xf32>
    %19 = arith.mulf %18, %18 : vector<4x32xf32>
    %cst_16 = arith.constant dense<0.000000e+00> : vector<4xf32>
    %20 = vector.multi_reduction <add>, %19, %cst_16 [1] : vector<4x32xf32> to vector<4xf32>
    %21 = vector.shape_cast %20 : vector<4xf32> to vector<4x1xf32>
    %cst_17 = arith.constant 3.200000e+01 : f32
    %22 = vector.broadcast %cst_17 : f32 to vector<4x1xf32>
    %23 = arith.divf %21, %22 : vector<4x1xf32>
    %24 = vector.broadcast %16 : vector<4x1xf32> to vector<4x32xf32>
    %25 = arith.subf %8, %24 : vector<4x32xf32>
    %cst_18 = arith.constant 9.99999997E-7 : f32
    %26 = vector.broadcast %cst_18 : f32 to vector<4x1xf32>
    %27 = arith.addf %23, %26 : vector<4x1xf32>
    %28 = math.rsqrt %27 : vector<4x1xf32>
    %29 = vector.broadcast %28 : vector<4x1xf32> to vector<4x32xf32>
    %30 = arith.mulf %25, %29 : vector<4x32xf32>
    %31 = vector.broadcast %10 : vector<1x32xf32> to vector<4x32xf32>
    %32 = arith.mulf %30, %31 : vector<4x32xf32>
    %33 = vector.broadcast %12 : vector<1x32xf32> to vector<4x32xf32>
    %34 = arith.addf %32, %33 : vector<4x32xf32>
    %c0_19 = arith.constant 0 : index
    %c0_20 = arith.constant 0 : index
    %c0_21 = arith.constant 0 : index
    %35 = vector.load %arg7[%c0_19, %c0_20, %c0_21] : memref<2x32x96xf32, #tpu.memory_space<vmem>>, vector<1x32x96xf32>
    %36 = vector.shape_cast %35 : vector<1x32x96xf32> to vector<32x96xf32>
    %cst_22 = arith.constant dense<0.000000e+00> : vector<4x96xf32>
    %37 = tpu.matmul %34, %36, %cst_22 {dimension_numbers = #tpu.dot_dimension_numbers<[1], [0], [0], [1], [0, 0, 1, 1], [], []>} : vector<4x32xf32>, vector<32x96xf32>, vector<4x96xf32> -> vector<4x96xf32>
    %c0_23 = arith.constant 0 : index
    %c0_24 = arith.constant 0 : index
    %c0_25 = arith.constant 0 : index
    %38 = vector.load %arg8[%c0_23, %c0_24, %c0_25] : memref<2x1x96xf32, #tpu.memory_space<vmem>>, vector<1x1x96xf32>
    %39 = vector.shape_cast %38 : vector<1x1x96xf32> to vector<1x96xf32>
    %40 = vector.broadcast %39 : vector<1x96xf32> to vector<4x96xf32>
    %41 = arith.addf %37, %40 : vector<4x96xf32>
    %42 = vector.extract_strided_slice %41 {offsets = [0, 0], sizes = [4, 32], strides = [1, 1]} : vector<4x96xf32> to vector<4x32xf32>
    %43 = vector.extract_strided_slice %41 {offsets = [0, 32], sizes = [4, 32], strides = [1, 1]} : vector<4x96xf32> to vector<4x32xf32>
    %44 = vector.extract_strided_slice %41 {offsets = [0, 64], sizes = [4, 32], strides = [1, 1]} : vector<4x96xf32> to vector<4x32xf32>
    %45 = vector.extract_strided_slice %42 {offsets = [0, 0], sizes = [4, 8], strides = [1, 1]} : vector<4x32xf32> to vector<4x8xf32>
    %46 = vector.extract_strided_slice %43 {offsets = [0, 0], sizes = [4, 8], strides = [1, 1]} : vector<4x32xf32> to vector<4x8xf32>
    %47 = vector.extract_strided_slice %44 {offsets = [0, 0], sizes = [4, 8], strides = [1, 1]} : vector<4x32xf32> to vector<4x8xf32>
    %cst_26 = arith.constant dense<0.000000e+00> : vector<4x4xf32>
    %48 = tpu.matmul %45, %46, %cst_26 {dimension_numbers = #tpu.dot_dimension_numbers<[1], [1], [0], [0], [0, 0, 1, 0], [], []>} : vector<4x8xf32>, vector<4x8xf32>, vector<4x4xf32> -> vector<4x4xf32>
    %cst_27 = arith.constant dense<0xFF800000> : vector<4xf32>
    %49 = vector.multi_reduction <maximumf>, %48, %cst_27 [1] : vector<4x4xf32> to vector<4xf32>
    %50 = vector.shape_cast %49 : vector<4xf32> to vector<4x1xf32>
    %51 = vector.broadcast %50 : vector<4x1xf32> to vector<4x4xf32>
    %52 = arith.subf %48, %51 : vector<4x4xf32>
    %53 = math.exp %52 : vector<4x4xf32>
    %cst_28 = arith.constant dense<0.000000e+00> : vector<4xf32>
    %54 = vector.multi_reduction <add>, %53, %cst_28 [1] : vector<4x4xf32> to vector<4xf32>
    %55 = vector.shape_cast %54 : vector<4xf32> to vector<4x1xf32>
    %56 = tpu.reciprocal %55 {approx = true} : vector<4x1xf32> -> vector<4x1xf32>
    %57 = vector.broadcast %56 : vector<4x1xf32> to vector<4x4xf32>
    %58 = arith.mulf %53, %57 : vector<4x4xf32>
    %cst_29 = arith.constant dense<0.000000e+00> : vector<4x8xf32>
    %59 = tpu.matmul %58, %47, %cst_29 {dimension_numbers = #tpu.dot_dimension_numbers<[1], [0], [0], [1], [0, 0, 1, 1], [], []>} : vector<4x4xf32>, vector<4x8xf32>, vector<4x8xf32> -> vector<4x8xf32>
    %c0_30 = arith.constant 0 : index
    %c0_31 = arith.constant 0 : index
    %60 = vector.load %arg20[%c0_30, %c0_31] : memref<4x32xf32, #tpu.memory_space<vmem>>, vector<4x8xf32>
    tpu.vector_store %arg20[%c0_30, %c0_31], %59 {strides = array<i32>} : memref<4x32xf32, #tpu.memory_space<vmem>>, vector<4x8xf32>,
    %61 = vector.extract_strided_slice %42 {offsets = [0, 8], sizes = [4, 8], strides = [1, 1]} : vector<4x32xf32> to vector<4x8xf32>
    %62 = vector.extract_strided_slice %43 {offsets = [0, 8], sizes = [4, 8], strides = [1, 1]} : vector<4x32xf32> to vector<4x8xf32>
    %63 = vector.extract_strided_slice %44 {offsets = [0, 8], sizes = [4, 8], strides = [1, 1]} : vector<4x32xf32> to vector<4x8xf32>
    %cst_32 = arith.constant dense<0.000000e+00> : vector<4x4xf32>
    %64 = tpu.matmul %61, %62, %cst_32 {dimension_numbers = #tpu.dot_dimension_numbers<[1], [1], [0], [0], [0, 0, 1, 0], [], []>} : vector<4x8xf32>, vector<4x8xf32>, vector<4x4xf32> -> vector<4x4xf32>
    %cst_33 = arith.constant dense<0xFF800000> : vector<4xf32>
    %65 = vector.multi_reduction <maximumf>, %64, %cst_33 [1] : vector<4x4xf32> to vector<4xf32>
    %66 = vector.shape_cast %65 : vector<4xf32> to vector<4x1xf32>
    %67 = vector.broadcast %66 : vector<4x1xf32> to vector<4x4xf32>
    %68 = arith.subf %64, %67 : vector<4x4xf32>
    %69 = math.exp %68 : vector<4x4xf32>
    %cst_34 = arith.constant dense<0.000000e+00> : vector<4xf32>
    %70 = vector.multi_reduction <add>, %69, %cst_34 [1] : vector<4x4xf32> to vector<4xf32>
    %71 = vector.shape_cast %70 : vector<4xf32> to vector<4x1xf32>
    %72 = tpu.reciprocal %71 {approx = true} : vector<4x1xf32> -> vector<4x1xf32>
    %73 = vector.broadcast %72 : vector<4x1xf32> to vector<4x4xf32>
    %74 = arith.mulf %69, %73 : vector<4x4xf32>
    %cst_35 = arith.constant dense<0.000000e+00> : vector<4x8xf32>
    %75 = tpu.matmul %74, %63, %cst_35 {dimension_numbers = #tpu.dot_dimension_numbers<[1], [0], [0], [1], [0, 0, 1, 1], [], []>} : vector<4x4xf32>, vector<4x8xf32>, vector<4x8xf32> -> vector<4x8xf32>
    %c0_36 = arith.constant 0 : index
    %c8 = arith.constant 8 : index
    %76 = vector.load %arg20[%c0_36, %c8] : memref<4x32xf32, #tpu.memory_space<vmem>>, vector<4x8xf32>
    tpu.vector_store %arg20[%c0_36, %c8], %75 {strides = array<i32>} : memref<4x32xf32, #tpu.memory_space<vmem>>, vector<4x8xf32>,
    %77 = vector.extract_strided_slice %42 {offsets = [0, 16], sizes = [4, 8], strides = [1, 1]} : vector<4x32xf32> to vector<4x8xf32>
    %78 = vector.extract_strided_slice %43 {offsets = [0, 16], sizes = [4, 8], strides = [1, 1]} : vector<4x32xf32> to vector<4x8xf32>
    %79 = vector.extract_strided_slice %44 {offsets = [0, 16], sizes = [4, 8], strides = [1, 1]} : vector<4x32xf32> to vector<4x8xf32>
    %cst_37 = arith.constant dense<0.000000e+00> : vector<4x4xf32>
    %80 = tpu.matmul %77, %78, %cst_37 {dimension_numbers = #tpu.dot_dimension_numbers<[1], [1], [0], [0], [0, 0, 1, 0], [], []>} : vector<4x8xf32>, vector<4x8xf32>, vector<4x4xf32> -> vector<4x4xf32>
    %cst_38 = arith.constant dense<0xFF800000> : vector<4xf32>
    %81 = vector.multi_reduction <maximumf>, %80, %cst_38 [1] : vector<4x4xf32> to vector<4xf32>
    %82 = vector.shape_cast %81 : vector<4xf32> to vector<4x1xf32>
    %83 = vector.broadcast %82 : vector<4x1xf32> to vector<4x4xf32>
    %84 = arith.subf %80, %83 : vector<4x4xf32>
    %85 = math.exp %84 : vector<4x4xf32>
    %cst_39 = arith.constant dense<0.000000e+00> : vector<4xf32>
    %86 = vector.multi_reduction <add>, %85, %cst_39 [1] : vector<4x4xf32> to vector<4xf32>
    %87 = vector.shape_cast %86 : vector<4xf32> to vector<4x1xf32>
    %88 = tpu.reciprocal %87 {approx = true} : vector<4x1xf32> -> vector<4x1xf32>
    %89 = vector.broadcast %88 : vector<4x1xf32> to vector<4x4xf32>
    %90 = arith.mulf %85, %89 : vector<4x4xf32>
    %cst_40 = arith.constant dense<0.000000e+00> : vector<4x8xf32>
    %91 = tpu.matmul %90, %79, %cst_40 {dimension_numbers = #tpu.dot_dimension_numbers<[1], [0], [0], [1], [0, 0, 1, 1], [], []>} : vector<4x4xf32>, vector<4x8xf32>, vector<4x8xf32> -> vector<4x8xf32>
    %c0_41 = arith.constant 0 : index
    %c16 = arith.constant 16 : index
    %92 = vector.load %arg20[%c0_41, %c16] : memref<4x32xf32, #tpu.memory_space<vmem>>, vector<4x8xf32>
    tpu.vector_store %arg20[%c0_41, %c16], %91 {strides = array<i32>} : memref<4x32xf32, #tpu.memory_space<vmem>>, vector<4x8xf32>,
    %93 = vector.extract_strided_slice %42 {offsets = [0, 24], sizes = [4, 8], strides = [1, 1]} : vector<4x32xf32> to vector<4x8xf32>
    %94 = vector.extract_strided_slice %43 {offsets = [0, 24], sizes = [4, 8], strides = [1, 1]} : vector<4x32xf32> to vector<4x8xf32>
    %95 = vector.extract_strided_slice %44 {offsets = [0, 24], sizes = [4, 8], strides = [1, 1]} : vector<4x32xf32> to vector<4x8xf32>
    %cst_42 = arith.constant dense<0.000000e+00> : vector<4x4xf32>
    %96 = tpu.matmul %93, %94, %cst_42 {dimension_numbers = #tpu.dot_dimension_numbers<[1], [1], [0], [0], [0, 0, 1, 0], [], []>} : vector<4x8xf32>, vector<4x8xf32>, vector<4x4xf32> -> vector<4x4xf32>
    %cst_43 = arith.constant dense<0xFF800000> : vector<4xf32>
    %97 = vector.multi_reduction <maximumf>, %96, %cst_43 [1] : vector<4x4xf32> to vector<4xf32>
    %98 = vector.shape_cast %97 : vector<4xf32> to vector<4x1xf32>
    %99 = vector.broadcast %98 : vector<4x1xf32> to vector<4x4xf32>
    %100 = arith.subf %96, %99 : vector<4x4xf32>
    %101 = math.exp %100 : vector<4x4xf32>
    %cst_44 = arith.constant dense<0.000000e+00> : vector<4xf32>
    %102 = vector.multi_reduction <add>, %101, %cst_44 [1] : vector<4x4xf32> to vector<4xf32>
    %103 = vector.shape_cast %102 : vector<4xf32> to vector<4x1xf32>
    %104 = tpu.reciprocal %103 {approx = true} : vector<4x1xf32> -> vector<4x1xf32>
    %105 = vector.broadcast %104 : vector<4x1xf32> to vector<4x4xf32>
    %106 = arith.mulf %101, %105 : vector<4x4xf32>
    %cst_45 = arith.constant dense<0.000000e+00> : vector<4x8xf32>
    %107 = tpu.matmul %106, %95, %cst_45 {dimension_numbers = #tpu.dot_dimension_numbers<[1], [0], [0], [1], [0, 0, 1, 1], [], []>} : vector<4x4xf32>, vector<4x8xf32>, vector<4x8xf32> -> vector<4x8xf32>
    %c0_46 = arith.constant 0 : index
    %c24 = arith.constant 24 : index
    %108 = vector.load %arg20[%c0_46, %c24] : memref<4x32xf32, #tpu.memory_space<vmem>>, vector<4x8xf32>
    tpu.vector_store %arg20[%c0_46, %c24], %107 {strides = array<i32>} : memref<4x32xf32, #tpu.memory_space<vmem>>, vector<4x8xf32>,
    %c0_47 = arith.constant 0 : index
    %c0_48 = arith.constant 0 : index
    %109 = vector.load %arg20[%c0_47, %c0_48] : memref<4x32xf32, #tpu.memory_space<vmem>>, vector<4x32xf32>
    %c0_49 = arith.constant 0 : index
    %c0_50 = arith.constant 0 : index
    %c0_51 = arith.constant 0 : index
    %110 = vector.load %arg9[%c0_49, %c0_50, %c0_51] : memref<2x32x32xf32, #tpu.memory_space<vmem>>, vector<1x32x32xf32>
    %111 = vector.shape_cast %110 : vector<1x32x32xf32> to vector<32x32xf32>
    %cst_52 = arith.constant dense<0.000000e+00> : vector<4x32xf32>
    %112 = tpu.matmul %109, %111, %cst_52 {dimension_numbers = #tpu.dot_dimension_numbers<[1], [0], [0], [1], [0, 0, 1, 1], [], []>} : vector<4x32xf32>, vector<32x32xf32>, vector<4x32xf32> -> vector<4x32xf32>
    %c0_53 = arith.constant 0 : index
    %c0_54 = arith.constant 0 : index
    %c0_55 = arith.constant 0 : index
    %113 = vector.load %arg10[%c0_53, %c0_54, %c0_55] : memref<2x1x32xf32, #tpu.memory_space<vmem>>, vector<1x1x32xf32>
    %114 = vector.shape_cast %113 : vector<1x1x32xf32> to vector<1x32xf32>
    %115 = vector.broadcast %114 : vector<1x32xf32> to vector<4x32xf32>
    %116 = arith.addf %112, %115 : vector<4x32xf32>
    %117 = arith.addf %8, %116 : vector<4x32xf32>
    %c0_56 = arith.constant 0 : index
    %c0_57 = arith.constant 0 : index
    %c0_58 = arith.constant 0 : index
    %118 = vector.load %arg11[%c0_56, %c0_57, %c0_58] : memref<2x1x32xf32, #tpu.memory_space<vmem>>, vector<1x1x32xf32>
    %119 = vector.shape_cast %118 : vector<1x1x32xf32> to vector<1x32xf32>
    %c0_59 = arith.constant 0 : index
    %c0_60 = arith.constant 0 : index
    %c0_61 = arith.constant 0 : index
    %120 = vector.load %arg12[%c0_59, %c0_60, %c0_61] : memref<2x1x32xf32, #tpu.memory_space<vmem>>, vector<1x1x32xf32>
    %121 = vector.shape_cast %120 : vector<1x1x32xf32> to vector<1x32xf32>
    %cst_62 = arith.constant dense<0.000000e+00> : vector<4xf32>
    %122 = vector.multi_reduction <add>, %117, %cst_62 [1] : vector<4x32xf32> to vector<4xf32>
    %123 = vector.shape_cast %122 : vector<4xf32> to vector<4x1xf32>
    %cst_63 = arith.constant 3.200000e+01 : f32
    %124 = vector.broadcast %cst_63 : f32 to vector<4x1xf32>
    %125 = arith.divf %123, %124 : vector<4x1xf32>
    %126 = vector.broadcast %125 : vector<4x1xf32> to vector<4x32xf32>
    %127 = arith.subf %117, %126 : vector<4x32xf32>
    %128 = arith.mulf %127, %127 : vector<4x32xf32>
    %cst_64 = arith.constant dense<0.000000e+00> : vector<4xf32>
    %129 = vector.multi_reduction <add>, %128, %cst_64 [1] : vector<4x32xf32> to vector<4xf32>
    %130 = vector.shape_cast %129 : vector<4xf32> to vector<4x1xf32>
    %cst_65 = arith.constant 3.200000e+01 : f32
    %131 = vector.broadcast %cst_65 : f32 to vector<4x1xf32>
    %132 = arith.divf %130, %131 : vector<4x1xf32>
    %133 = vector.broadcast %125 : vector<4x1xf32> to vector<4x32xf32>
    %134 = arith.subf %117, %133 : vector<4x32xf32>
    %cst_66 = arith.constant 9.99999997E-7 : f32
    %135 = vector.broadcast %cst_66 : f32 to vector<4x1xf32>
    %136 = arith.addf %132, %135 : vector<4x1xf32>
    %137 = math.rsqrt %136 : vector<4x1xf32>
    %138 = vector.broadcast %137 : vector<4x1xf32> to vector<4x32xf32>
    %139 = arith.mulf %134, %138 : vector<4x32xf32>
    %140 = vector.broadcast %119 : vector<1x32xf32> to vector<4x32xf32>
    %141 = arith.mulf %139, %140 : vector<4x32xf32>
    %142 = vector.broadcast %121 : vector<1x32xf32> to vector<4x32xf32>
    %143 = arith.addf %141, %142 : vector<4x32xf32>
    %c0_67 = arith.constant 0 : index
    %c0_68 = arith.constant 0 : index
    %c0_69 = arith.constant 0 : index
    %144 = vector.load %arg13[%c0_67, %c0_68, %c0_69] : memref<2x32x64xf32, #tpu.memory_space<vmem>>, vector<1x32x64xf32>
    %145 = vector.shape_cast %144 : vector<1x32x64xf32> to vector<32x64xf32>
    %cst_70 = arith.constant dense<0.000000e+00> : vector<4x64xf32>
    %146 = tpu.matmul %143, %145, %cst_70 {dimension_numbers = #tpu.dot_dimension_numbers<[1], [0], [0], [1], [0, 0, 1, 1], [], []>} : vector<4x32xf32>, vector<32x64xf32>, vector<4x64xf32> -> vector<4x64xf32>
    %c0_71 = arith.constant 0 : index
    %c0_72 = arith.constant 0 : index
    %c0_73 = arith.constant 0 : index
    %147 = vector.load %arg14[%c0_71, %c0_72, %c0_73] : memref<2x1x64xf32, #tpu.memory_space<vmem>>, vector<1x1x64xf32>
    %148 = vector.shape_cast %147 : vector<1x1x64xf32> to vector<1x64xf32>
    %149 = vector.broadcast %148 : vector<1x64xf32> to vector<4x64xf32>
    %150 = arith.addf %146, %149 : vector<4x64xf32>
    %cst_74 = arith.constant 5.000000e-01 : f32
    %151 = vector.broadcast %cst_74 : f32 to vector<4x64xf32>
    %152 = arith.mulf %151, %150 : vector<4x64xf32>
    %cst_75 = arith.constant 4.471500e-02 : f32
    %153 = vector.broadcast %cst_75 : f32 to vector<4x64xf32>
    %154 = arith.mulf %153, %150 : vector<4x64xf32>
    %155 = arith.mulf %154, %150 : vector<4x64xf32>
    %156 = arith.mulf %155, %150 : vector<4x64xf32>
    %157 = arith.addf %150, %156 : vector<4x64xf32>
    %cst_76 = arith.constant 0.797884583 : f32
    %158 = vector.broadcast %cst_76 : f32 to vector<4x64xf32>
    %159 = arith.mulf %158, %157 : vector<4x64xf32>
    %160 = math.tanh %159 : vector<4x64xf32>
    %cst_77 = arith.constant 1.000000e+00 : f32
    %161 = vector.broadcast %cst_77 : f32 to vector<4x64xf32>
    %162 = arith.addf %161, %160 : vector<4x64xf32>
    %163 = arith.mulf %152, %162 : vector<4x64xf32>
    %c0_78 = arith.constant 0 : index
    %c0_79 = arith.constant 0 : index
    %c0_80 = arith.constant 0 : index
    %164 = vector.load %arg15[%c0_78, %c0_79, %c0_80] : memref<2x64x32xf32, #tpu.memory_space<vmem>>, vector<1x64x32xf32>
    %165 = vector.shape_cast %164 : vector<1x64x32xf32> to vector<64x32xf32>
    %cst_81 = arith.constant dense<0.000000e+00> : vector<4x32xf32>
    %166 = tpu.matmul %163, %165, %cst_81 {dimension_numbers = #tpu.dot_dimension_numbers<[1], [0], [0], [1], [0, 0, 1, 1], [], []>} : vector<4x64xf32>, vector<64x32xf32>, vector<4x32xf32> -> vector<4x32xf32>
    %c0_82 = arith.constant 0 : index
    %c0_83 = arith.constant 0 : index
    %c0_84 = arith.constant 0 : index
    %167 = vector.load %arg16[%c0_82, %c0_83, %c0_84] : memref<2x1x32xf32, #tpu.memory_space<vmem>>, vector<1x1x32xf32>
    %168 = vector.shape_cast %167 : vector<1x1x32xf32> to vector<1x32xf32>
    %169 = vector.broadcast %168 : vector<1x32xf32> to vector<4x32xf32>
    %170 = arith.addf %166, %169 : vector<4x32xf32>
    %171 = arith.addf %117, %170 : vector<4x32xf32>
    %c1 = arith.constant 1 : index
    %c0_85 = arith.constant 0 : index
    %c0_86 = arith.constant 0 : index
    %172 = vector.load %arg5[%c1, %c0_85, %c0_86] : memref<2x1x32xf32, #tpu.memory_space<vmem>>, vector<1x1x32xf32>
    %173 = vector.shape_cast %172 : vector<1x1x32xf32> to vector<1x32xf32>
    %c1_87 = arith.constant 1 : index
    %c0_88 = arith.constant 0 : index
    %c0_89 = arith.constant 0 : index
    %174 = vector.load %arg6[%c1_87, %c0_88, %c0_89] : memref<2x1x32xf32, #tpu.memory_space<vmem>>, vector<1x1x32xf32>
    %175 = vector.shape_cast %174 : vector<1x1x32xf32> to vector<1x32xf32>
    %cst_90 = arith.constant dense<0.000000e+00> : vector<4xf32>
    %176 = vector.multi_reduction <add>, %171, %cst_90 [1] : vector<4x32xf32> to vector<4xf32>
    %177 = vector.shape_cast %176 : vector<4xf32> to vector<4x1xf32>
    %cst_91 = arith.constant 3.200000e+01 : f32
    %178 = vector.broadcast %cst_91 : f32 to vector<4x1xf32>
    %179 = arith.divf %177, %178 : vector<4x1xf32>
    %180 = vector.broadcast %179 : vector<4x1xf32> to vector<4x32xf32>
    %181 = arith.subf %171, %180 : vector<4x32xf32>
    %182 = arith.mulf %181, %181 : vector<4x32xf32>
    %cst_92 = arith.constant dense<0.000000e+00> : vector<4xf32>
    %183 = vector.multi_reduction <add>, %182, %cst_92 [1] : vector<4x32xf32> to vector<4xf32>
    %184 = vector.shape_cast %183 : vector<4xf32> to vector<4x1xf32>
    %cst_93 = arith.constant 3.200000e+01 : f32
    %185 = vector.broadcast %cst_93 : f32 to vector<4x1xf32>
    %186 = arith.divf %184, %185 : vector<4x1xf32>
    %187 = vector.broadcast %179 : vector<4x1xf32> to vector<4x32xf32>
    %188 = arith.subf %171, %187 : vector<4x32xf32>
    %cst_94 = arith.constant 9.99999997E-7 : f32
    %189 = vector.broadcast %cst_94 : f32 to vector<4x1xf32>
    %190 = arith.addf %186, %189 : vector<4x1xf32>
    %191 = math.rsqrt %190 : vector<4x1xf32>
    %192 = vector.broadcast %191 : vector<4x1xf32> to vector<4x32xf32>
    %193 = arith.mulf %188, %192 : vector<4x32xf32>
    %194 = vector.broadcast %173 : vector<1x32xf32> to vector<4x32xf32>
    %195 = arith.mulf %193, %194 : vector<4x32xf32>
    %196 = vector.broadcast %175 : vector<1x32xf32> to vector<4x32xf32>
    %197 = arith.addf %195, %196 : vector<4x32xf32>
    %c1_95 = arith.constant 1 : index
    %c0_96 = arith.constant 0 : index
    %c0_97 = arith.constant 0 : index
    %198 = vector.load %arg7[%c1_95, %c0_96, %c0_97] : memref<2x32x96xf32, #tpu.memory_space<vmem>>, vector<1x32x96xf32>
    %199 = vector.shape_cast %198 : vector<1x32x96xf32> to vector<32x96xf32>
    %cst_98 = arith.constant dense<0.000000e+00> : vector<4x96xf32>
    %200 = tpu.matmul %197, %199, %cst_98 {dimension_numbers = #tpu.dot_dimension_numbers<[1], [0], [0], [1], [0, 0, 1, 1], [], []>} : vector<4x32xf32>, vector<32x96xf32>, vector<4x96xf32> -> vector<4x96xf32>
    %c1_99 = arith.constant 1 : index
    %c0_100 = arith.constant 0 : index
    %c0_101 = arith.constant 0 : index
    %201 = vector.load %arg8[%c1_99, %c0_100, %c0_101] : memref<2x1x96xf32, #tpu.memory_space<vmem>>, vector<1x1x96xf32>
    %202 = vector.shape_cast %201 : vector<1x1x96xf32> to vector<1x96xf32>
    %203 = vector.broadcast %202 : vector<1x96xf32> to vector<4x96xf32>
    %204 = arith.addf %200, %203 : vector<4x96xf32>
    %205 = vector.extract_strided_slice %204 {offsets = [0, 0], sizes = [4, 32], strides = [1, 1]} : vector<4x96xf32> to vector<4x32xf32>
    %206 = vector.extract_strided_slice %204 {offsets = [0, 32], sizes = [4, 32], strides = [1, 1]} : vector<4x96xf32> to vector<4x32xf32>
    %207 = vector.extract_strided_slice %204 {offsets = [0, 64], sizes = [4, 32], strides = [1, 1]} : vector<4x96xf32> to vector<4x32xf32>
    %208 = vector.extract_strided_slice %205 {offsets = [0, 0], sizes = [4, 8], strides = [1, 1]} : vector<4x32xf32> to vector<4x8xf32>
    %209 = vector.extract_strided_slice %206 {offsets = [0, 0], sizes = [4, 8], strides = [1, 1]} : vector<4x32xf32> to vector<4x8xf32>
    %210 = vector.extract_strided_slice %207 {offsets = [0, 0], sizes = [4, 8], strides = [1, 1]} : vector<4x32xf32> to vector<4x8xf32>
    %cst_102 = arith.constant dense<0.000000e+00> : vector<4x4xf32>
    %211 = tpu.matmul %208, %209, %cst_102 {dimension_numbers = #tpu.dot_dimension_numbers<[1], [1], [0], [0], [0, 0, 1, 0], [], []>} : vector<4x8xf32>, vector<4x8xf32>, vector<4x4xf32> -> vector<4x4xf32>
    %cst_103 = arith.constant dense<0xFF800000> : vector<4xf32>
    %212 = vector.multi_reduction <maximumf>, %211, %cst_103 [1] : vector<4x4xf32> to vector<4xf32>
    %213 = vector.shape_cast %212 : vector<4xf32> to vector<4x1xf32>
    %214 = vector.broadcast %213 : vector<4x1xf32> to vector<4x4xf32>
    %215 = arith.subf %211, %214 : vector<4x4xf32>
    %216 = math.exp %215 : vector<4x4xf32>
    %cst_104 = arith.constant dense<0.000000e+00> : vector<4xf32>
    %217 = vector.multi_reduction <add>, %216, %cst_104 [1] : vector<4x4xf32> to vector<4xf32>
    %218 = vector.shape_cast %217 : vector<4xf32> to vector<4x1xf32>
    %219 = tpu.reciprocal %218 {approx = true} : vector<4x1xf32> -> vector<4x1xf32>
    %220 = vector.broadcast %219 : vector<4x1xf32> to vector<4x4xf32>
    %221 = arith.mulf %216, %220 : vector<4x4xf32>
    %cst_105 = arith.constant dense<0.000000e+00> : vector<4x8xf32>
    %222 = tpu.matmul %221, %210, %cst_105 {dimension_numbers = #tpu.dot_dimension_numbers<[1], [0], [0], [1], [0, 0, 1, 1], [], []>} : vector<4x4xf32>, vector<4x8xf32>, vector<4x8xf32> -> vector<4x8xf32>
    %c0_106 = arith.constant 0 : index
    %c0_107 = arith.constant 0 : index
    %223 = vector.load %arg20[%c0_106, %c0_107] : memref<4x32xf32, #tpu.memory_space<vmem>>, vector<4x8xf32>
    tpu.vector_store %arg20[%c0_106, %c0_107], %222 {strides = array<i32>} : memref<4x32xf32, #tpu.memory_space<vmem>>, vector<4x8xf32>,
    %224 = vector.extract_strided_slice %205 {offsets = [0, 8], sizes = [4, 8], strides = [1, 1]} : vector<4x32xf32> to vector<4x8xf32>
    %225 = vector.extract_strided_slice %206 {offsets = [0, 8], sizes = [4, 8], strides = [1, 1]} : vector<4x32xf32> to vector<4x8xf32>
    %226 = vector.extract_strided_slice %207 {offsets = [0, 8], sizes = [4, 8], strides = [1, 1]} : vector<4x32xf32> to vector<4x8xf32>
    %cst_108 = arith.constant dense<0.000000e+00> : vector<4x4xf32>
    %227 = tpu.matmul %224, %225, %cst_108 {dimension_numbers = #tpu.dot_dimension_numbers<[1], [1], [0], [0], [0, 0, 1, 0], [], []>} : vector<4x8xf32>, vector<4x8xf32>, vector<4x4xf32> -> vector<4x4xf32>
    %cst_109 = arith.constant dense<0xFF800000> : vector<4xf32>
    %228 = vector.multi_reduction <maximumf>, %227, %cst_109 [1] : vector<4x4xf32> to vector<4xf32>
    %229 = vector.shape_cast %228 : vector<4xf32> to vector<4x1xf32>
    %230 = vector.broadcast %229 : vector<4x1xf32> to vector<4x4xf32>
    %231 = arith.subf %227, %230 : vector<4x4xf32>
    %232 = math.exp %231 : vector<4x4xf32>
    %cst_110 = arith.constant dense<0.000000e+00> : vector<4xf32>
    %233 = vector.multi_reduction <add>, %232, %cst_110 [1] : vector<4x4xf32> to vector<4xf32>
    %234 = vector.shape_cast %233 : vector<4xf32> to vector<4x1xf32>
    %235 = tpu.reciprocal %234 {approx = true} : vector<4x1xf32> -> vector<4x1xf32>
    %236 = vector.broadcast %235 : vector<4x1xf32> to vector<4x4xf32>
    %237 = arith.mulf %232, %236 : vector<4x4xf32>
    %cst_111 = arith.constant dense<0.000000e+00> : vector<4x8xf32>
    %238 = tpu.matmul %237, %226, %cst_111 {dimension_numbers = #tpu.dot_dimension_numbers<[1], [0], [0], [1], [0, 0, 1, 1], [], []>} : vector<4x4xf32>, vector<4x8xf32>, vector<4x8xf32> -> vector<4x8xf32>
    %c0_112 = arith.constant 0 : index
    %c8_113 = arith.constant 8 : index
    %239 = vector.load %arg20[%c0_112, %c8_113] : memref<4x32xf32, #tpu.memory_space<vmem>>, vector<4x8xf32>
    tpu.vector_store %arg20[%c0_112, %c8_113], %238 {strides = array<i32>} : memref<4x32xf32, #tpu.memory_space<vmem>>, vector<4x8xf32>,
    %240 = vector.extract_strided_slice %205 {offsets = [0, 16], sizes = [4, 8], strides = [1, 1]} : vector<4x32xf32> to vector<4x8xf32>
    %241 = vector.extract_strided_slice %206 {offsets = [0, 16], sizes = [4, 8], strides = [1, 1]} : vector<4x32xf32> to vector<4x8xf32>
    %242 = vector.extract_strided_slice %207 {offsets = [0, 16], sizes = [4, 8], strides = [1, 1]} : vector<4x32xf32> to vector<4x8xf32>
    %cst_114 = arith.constant dense<0.000000e+00> : vector<4x4xf32>
    %243 = tpu.matmul %240, %241, %cst_114 {dimension_numbers = #tpu.dot_dimension_numbers<[1], [1], [0], [0], [0, 0, 1, 0], [], []>} : vector<4x8xf32>, vector<4x8xf32>, vector<4x4xf32> -> vector<4x4xf32>
    %cst_115 = arith.constant dense<0xFF800000> : vector<4xf32>
    %244 = vector.multi_reduction <maximumf>, %243, %cst_115 [1] : vector<4x4xf32> to vector<4xf32>
    %245 = vector.shape_cast %244 : vector<4xf32> to vector<4x1xf32>
    %246 = vector.broadcast %245 : vector<4x1xf32> to vector<4x4xf32>
    %247 = arith.subf %243, %246 : vector<4x4xf32>
    %248 = math.exp %247 : vector<4x4xf32>
    %cst_116 = arith.constant dense<0.000000e+00> : vector<4xf32>
    %249 = vector.multi_reduction <add>, %248, %cst_116 [1] : vector<4x4xf32> to vector<4xf32>
    %250 = vector.shape_cast %249 : vector<4xf32> to vector<4x1xf32>
    %251 = tpu.reciprocal %250 {approx = true} : vector<4x1xf32> -> vector<4x1xf32>
    %252 = vector.broadcast %251 : vector<4x1xf32> to vector<4x4xf32>
    %253 = arith.mulf %248, %252 : vector<4x4xf32>
    %cst_117 = arith.constant dense<0.000000e+00> : vector<4x8xf32>
    %254 = tpu.matmul %253, %242, %cst_117 {dimension_numbers = #tpu.dot_dimension_numbers<[1], [0], [0], [1], [0, 0, 1, 1], [], []>} : vector<4x4xf32>, vector<4x8xf32>, vector<4x8xf32> -> vector<4x8xf32>
    %c0_118 = arith.constant 0 : index
    %c16_119 = arith.constant 16 : index
    %255 = vector.load %arg20[%c0_118, %c16_119] : memref<4x32xf32, #tpu.memory_space<vmem>>, vector<4x8xf32>
    tpu.vector_store %arg20[%c0_118, %c16_119], %254 {strides = array<i32>} : memref<4x32xf32, #tpu.memory_space<vmem>>, vector<4x8xf32>,
    %256 = vector.extract_strided_slice %205 {offsets = [0, 24], sizes = [4, 8], strides = [1, 1]} : vector<4x32xf32> to vector<4x8xf32>
    %257 = vector.extract_strided_slice %206 {offsets = [0, 24], sizes = [4, 8], strides = [1, 1]} : vector<4x32xf32> to vector<4x8xf32>
    %258 = vector.extract_strided_slice %207 {offsets = [0, 24], sizes = [4, 8], strides = [1, 1]} : vector<4x32xf32> to vector<4x8xf32>
    %cst_120 = arith.constant dense<0.000000e+00> : vector<4x4xf32>
    %259 = tpu.matmul %256, %257, %cst_120 {dimension_numbers = #tpu.dot_dimension_numbers<[1], [1], [0], [0], [0, 0, 1, 0], [], []>} : vector<4x8xf32>, vector<4x8xf32>, vector<4x4xf32> -> vector<4x4xf32>
    %cst_121 = arith.constant dense<0xFF800000> : vector<4xf32>
    %260 = vector.multi_reduction <maximumf>, %259, %cst_121 [1] : vector<4x4xf32> to vector<4xf32>
    %261 = vector.shape_cast %260 : vector<4xf32> to vector<4x1xf32>
    %262 = vector.broadcast %261 : vector<4x1xf32> to vector<4x4xf32>
    %263 = arith.subf %259, %262 : vector<4x4xf32>
    %264 = math.exp %263 : vector<4x4xf32>
    %cst_122 = arith.constant dense<0.000000e+00> : vector<4xf32>
    %265 = vector.multi_reduction <add>, %264, %cst_122 [1] : vector<4x4xf32> to vector<4xf32>
    %266 = vector.shape_cast %265 : vector<4xf32> to vector<4x1xf32>
    %267 = tpu.reciprocal %266 {approx = true} : vector<4x1xf32> -> vector<4x1xf32>
    %268 = vector.broadcast %267 : vector<4x1xf32> to vector<4x4xf32>
    %269 = arith.mulf %264, %268 : vector<4x4xf32>
    %cst_123 = arith.constant dense<0.000000e+00> : vector<4x8xf32>
    %270 = tpu.matmul %269, %258, %cst_123 {dimension_numbers = #tpu.dot_dimension_numbers<[1], [0], [0], [1], [0, 0, 1, 1], [], []>} : vector<4x4xf32>, vector<4x8xf32>, vector<4x8xf32> -> vector<4x8xf32>
    %c0_124 = arith.constant 0 : index
    %c24_125 = arith.constant 24 : index
    %271 = vector.load %arg20[%c0_124, %c24_125] : memref<4x32xf32, #tpu.memory_space<vmem>>, vector<4x8xf32>
    tpu.vector_store %arg20[%c0_124, %c24_125], %270 {strides = array<i32>} : memref<4x32xf32, #tpu.memory_space<vmem>>, vector<4x8xf32>,
    %c0_126 = arith.constant 0 : index
    %c0_127 = arith.constant 0 : index
    %272 = vector.load %arg20[%c0_126, %c0_127] : memref<4x32xf32, #tpu.memory_space<vmem>>, vector<4x32xf32>
    %c1_128 = arith.constant 1 : index
    %c0_129 = arith.constant 0 : index
    %c0_130 = arith.constant 0 : index
    %273 = vector.load %arg9[%c1_128, %c0_129, %c0_130] : memref<2x32x32xf32, #tpu.memory_space<vmem>>, vector<1x32x32xf32>
    %274 = vector.shape_cast %273 : vector<1x32x32xf32> to vector<32x32xf32>
    %cst_131 = arith.constant dense<0.000000e+00> : vector<4x32xf32>
    %275 = tpu.matmul %272, %274, %cst_131 {dimension_numbers = #tpu.dot_dimension_numbers<[1], [0], [0], [1], [0, 0, 1, 1], [], []>} : vector<4x32xf32>, vector<32x32xf32>, vector<4x32xf32> -> vector<4x32xf32>
    %c1_132 = arith.constant 1 : index
    %c0_133 = arith.constant 0 : index
    %c0_134 = arith.constant 0 : index
    %276 = vector.load %arg10[%c1_132, %c0_133, %c0_134] : memref<2x1x32xf32, #tpu.memory_space<vmem>>, vector<1x1x32xf32>
    %277 = vector.shape_cast %276 : vector<1x1x32xf32> to vector<1x32xf32>
    %278 = vector.broadcast %277 : vector<1x32xf32> to vector<4x32xf32>
    %279 = arith.addf %275, %278 : vector<4x32xf32>
    %280 = arith.addf %171, %279 : vector<4x32xf32>
    %c1_135 = arith.constant 1 : index
    %c0_136 = arith.constant 0 : index
    %c0_137 = arith.constant 0 : index
    %281 = vector.load %arg11[%c1_135, %c0_136, %c0_137] : memref<2x1x32xf32, #tpu.memory_space<vmem>>, vector<1x1x32xf32>
    %282 = vector.shape_cast %281 : vector<1x1x32xf32> to vector<1x32xf32>
    %c1_138 = arith.constant 1 : index
    %c0_139 = arith.constant 0 : index
    %c0_140 = arith.constant 0 : index
    %283 = vector.load %arg12[%c1_138, %c0_139, %c0_140] : memref<2x1x32xf32, #tpu.memory_space<vmem>>, vector<1x1x32xf32>
    %284 = vector.shape_cast %283 : vector<1x1x32xf32> to vector<1x32xf32>
    %cst_141 = arith.constant dense<0.000000e+00> : vector<4xf32>
    %285 = vector.multi_reduction <add>, %280, %cst_141 [1] : vector<4x32xf32> to vector<4xf32>
    %286 = vector.shape_cast %285 : vector<4xf32> to vector<4x1xf32>
    %cst_142 = arith.constant 3.200000e+01 : f32
    %287 = vector.broadcast %cst_142 : f32 to vector<4x1xf32>
    %288 = arith.divf %286, %287 : vector<4x1xf32>
    %289 = vector.broadcast %288 : vector<4x1xf32> to vector<4x32xf32>
    %290 = arith.subf %280, %289 : vector<4x32xf32>
    %291 = arith.mulf %290, %290 : vector<4x32xf32>
    %cst_143 = arith.constant dense<0.000000e+00> : vector<4xf32>
    %292 = vector.multi_reduction <add>, %291, %cst_143 [1] : vector<4x32xf32> to vector<4xf32>
    %293 = vector.shape_cast %292 : vector<4xf32> to vector<4x1xf32>
    %cst_144 = arith.constant 3.200000e+01 : f32
    %294 = vector.broadcast %cst_144 : f32 to vector<4x1xf32>
    %295 = arith.divf %293, %294 : vector<4x1xf32>
    %296 = vector.broadcast %288 : vector<4x1xf32> to vector<4x32xf32>
    %297 = arith.subf %280, %296 : vector<4x32xf32>
    %cst_145 = arith.constant 9.99999997E-7 : f32
    %298 = vector.broadcast %cst_145 : f32 to vector<4x1xf32>
    %299 = arith.addf %295, %298 : vector<4x1xf32>
    %300 = math.rsqrt %299 : vector<4x1xf32>
    %301 = vector.broadcast %300 : vector<4x1xf32> to vector<4x32xf32>
    %302 = arith.mulf %297, %301 : vector<4x32xf32>
    %303 = vector.broadcast %282 : vector<1x32xf32> to vector<4x32xf32>
    %304 = arith.mulf %302, %303 : vector<4x32xf32>
    %305 = vector.broadcast %284 : vector<1x32xf32> to vector<4x32xf32>
    %306 = arith.addf %304, %305 : vector<4x32xf32>
    %c1_146 = arith.constant 1 : index
    %c0_147 = arith.constant 0 : index
    %c0_148 = arith.constant 0 : index
    %307 = vector.load %arg13[%c1_146, %c0_147, %c0_148] : memref<2x32x64xf32, #tpu.memory_space<vmem>>, vector<1x32x64xf32>
    %308 = vector.shape_cast %307 : vector<1x32x64xf32> to vector<32x64xf32>
    %cst_149 = arith.constant dense<0.000000e+00> : vector<4x64xf32>
    %309 = tpu.matmul %306, %308, %cst_149 {dimension_numbers = #tpu.dot_dimension_numbers<[1], [0], [0], [1], [0, 0, 1, 1], [], []>} : vector<4x32xf32>, vector<32x64xf32>, vector<4x64xf32> -> vector<4x64xf32>
    %c1_150 = arith.constant 1 : index
    %c0_151 = arith.constant 0 : index
    %c0_152 = arith.constant 0 : index
    %310 = vector.load %arg14[%c1_150, %c0_151, %c0_152] : memref<2x1x64xf32, #tpu.memory_space<vmem>>, vector<1x1x64xf32>
    %311 = vector.shape_cast %310 : vector<1x1x64xf32> to vector<1x64xf32>
    %312 = vector.broadcast %311 : vector<1x64xf32> to vector<4x64xf32>
    %313 = arith.addf %309, %312 : vector<4x64xf32>
    %cst_153 = arith.constant 5.000000e-01 : f32
    %314 = vector.broadcast %cst_153 : f32 to vector<4x64xf32>
    %315 = arith.mulf %314, %313 : vector<4x64xf32>
    %cst_154 = arith.constant 4.471500e-02 : f32
    %316 = vector.broadcast %cst_154 : f32 to vector<4x64xf32>
    %317 = arith.mulf %316, %313 : vector<4x64xf32>
    %318 = arith.mulf %317, %313 : vector<4x64xf32>
    %319 = arith.mulf %318, %313 : vector<4x64xf32>
    %320 = arith.addf %313, %319 : vector<4x64xf32>
    %cst_155 = arith.constant 0.797884583 : f32
    %321 = vector.broadcast %cst_155 : f32 to vector<4x64xf32>
    %322 = arith.mulf %321, %320 : vector<4x64xf32>
    %323 = math.tanh %322 : vector<4x64xf32>
    %cst_156 = arith.constant 1.000000e+00 : f32
    %324 = vector.broadcast %cst_156 : f32 to vector<4x64xf32>
    %325 = arith.addf %324, %323 : vector<4x64xf32>
    %326 = arith.mulf %315, %325 : vector<4x64xf32>
    %c1_157 = arith.constant 1 : index
    %c0_158 = arith.constant 0 : index
    %c0_159 = arith.constant 0 : index
    %327 = vector.load %arg15[%c1_157, %c0_158, %c0_159] : memref<2x64x32xf32, #tpu.memory_space<vmem>>, vector<1x64x32xf32>
    %328 = vector.shape_cast %327 : vector<1x64x32xf32> to vector<64x32xf32>
    %cst_160 = arith.constant dense<0.000000e+00> : vector<4x32xf32>
    %329 = tpu.matmul %326, %328, %cst_160 {dimension_numbers = #tpu.dot_dimension_numbers<[1], [0], [0], [1], [0, 0, 1, 1], [], []>} : vector<4x64xf32>, vector<64x32xf32>, vector<4x32xf32> -> vector<4x32xf32>
    %c1_161 = arith.constant 1 : index
    %c0_162 = arith.constant 0 : index
    %c0_163 = arith.constant 0 : index
    %330 = vector.load %arg16[%c1_161, %c0_162, %c0_163] : memref<2x1x32xf32, #tpu.memory_space<vmem>>, vector<1x1x32xf32>
    %331 = vector.shape_cast %330 : vector<1x1x32xf32> to vector<1x32xf32>
    %332 = vector.broadcast %331 : vector<1x32xf32> to vector<4x32xf32>
    %333 = arith.addf %329, %332 : vector<4x32xf32>
    %334 = arith.addf %280, %333 : vector<4x32xf32>
    %c0_164 = arith.constant 0 : index
    %c0_165 = arith.constant 0 : index
    %335 = vector.load %arg17[%c0_164, %c0_165] : memref<1x32xf32, #tpu.memory_space<vmem>>, vector<1x32xf32>
    %c0_166 = arith.constant 0 : index
    %c0_167 = arith.constant 0 : index
    %336 = vector.load %arg18[%c0_166, %c0_167] : memref<1x32xf32, #tpu.memory_space<vmem>>, vector<1x32xf32>
    %cst_168 = arith.constant dense<0.000000e+00> : vector<4xf32>
    %337 = vector.multi_reduction <add>, %334, %cst_168 [1] : vector<4x32xf32> to vector<4xf32>
    %338 = vector.shape_cast %337 : vector<4xf32> to vector<4x1xf32>
    %cst_169 = arith.constant 3.200000e+01 : f32
    %339 = vector.broadcast %cst_169 : f32 to vector<4x1xf32>
    %340 = arith.divf %338, %339 : vector<4x1xf32>
    %341 = vector.broadcast %340 : vector<4x1xf32> to vector<4x32xf32>
    %342 = arith.subf %334, %341 : vector<4x32xf32>
    %343 = arith.mulf %342, %342 : vector<4x32xf32>
    %cst_170 = arith.constant dense<0.000000e+00> : vector<4xf32>
    %344 = vector.multi_reduction <add>, %343, %cst_170 [1] : vector<4x32xf32> to vector<4xf32>
    %345 = vector.shape_cast %344 : vector<4xf32> to vector<4x1xf32>
    %cst_171 = arith.constant 3.200000e+01 : f32
    %346 = vector.broadcast %cst_171 : f32 to vector<4x1xf32>
    %347 = arith.divf %345, %346 : vector<4x1xf32>
    %348 = vector.broadcast %340 : vector<4x1xf32> to vector<4x32xf32>
    %349 = arith.subf %334, %348 : vector<4x32xf32>
    %cst_172 = arith.constant 9.99999997E-7 : f32
    %350 = vector.broadcast %cst_172 : f32 to vector<4x1xf32>
    %351 = arith.addf %347, %350 : vector<4x1xf32>
    %352 = math.rsqrt %351 : vector<4x1xf32>
    %353 = vector.broadcast %352 : vector<4x1xf32> to vector<4x32xf32>
    %354 = arith.mulf %349, %353 : vector<4x32xf32>
    %355 = vector.broadcast %335 : vector<1x32xf32> to vector<4x32xf32>
    %356 = arith.mulf %354, %355 : vector<4x32xf32>
    %357 = vector.broadcast %336 : vector<1x32xf32> to vector<4x32xf32>
    %358 = arith.addf %356, %357 : vector<4x32xf32>
    %c0_173 = arith.constant 0 : index
    %c0_174 = arith.constant 0 : index
    %c0_175 = arith.constant 0 : index
    %359 = vector.load %arg19[%c0_173, %c0_174, %c0_175] : memref<1x4x32xf32, #tpu.memory_space<vmem>>, vector<1x4x32xf32>
    %360 = vector.shape_cast %359 : vector<1x4x32xf32> to vector<4x32xf32>
    %361 = vector.shape_cast %358 : vector<4x32xf32> to vector<1x4x32xf32>
    tpu.vector_store %arg19[%c0_173, %c0_174, %c0_175], %361 {strides = array<i32>} : memref<1x4x32xf32, #tpu.memory_space<vmem>>, vector<1x4x32xf32>,
    return
  }
  func.func @transform_0(%arg0: i32) -> (i32, i32, i32) {
    %c0_i32 = arith.constant 0 : i32
    %c0_i32_0 = arith.constant 0 : i32
    %c0_i32_1 = arith.constant 0 : i32
    return %arg0, %c0_i32, %c0_i32_0 : i32, i32, i32
  }
  func.func @transform_1(%arg0: i32) -> (i32, i32) {
    %c0_i32 = arith.constant 0 : i32
    %c0_i32_0 = arith.constant 0 : i32
    %c0_i32_1 = arith.constant 0 : i32
    return %c0_i32, %c0_i32_0 : i32, i32
  }
  func.func @transform_2(%arg0: i32) -> (i32, i32) {
    %c0_i32 = arith.constant 0 : i32
    %c0_i32_0 = arith.constant 0 : i32
    %c0_i32_1 = arith.constant 0 : i32
    return %c0_i32, %c0_i32_0 : i32, i32
  }
  func.func @transform_3(%arg0: i32) -> (i32, i32) {
    %c0_i32 = arith.constant 0 : i32
    %c0_i32_0 = arith.constant 0 : i32
    %c0_i32_1 = arith.constant 0 : i32
    return %c0_i32, %c0_i32_0 : i32, i32
  }
  func.func @transform_4(%arg0: i32) -> (i32, i32, i32) {
    %c0_i32 = arith.constant 0 : i32
    %c0_i32_0 = arith.constant 0 : i32
    %c0_i32_1 = arith.constant 0 : i32
    %c0_i32_2 = arith.constant 0 : i32
    return %c0_i32, %c0_i32_0, %c0_i32_1 : i32, i32, i32
  }
  func.func @transform_5(%arg0: i32) -> (i32, i32, i32) {
    %c0_i32 = arith.constant 0 : i32
    %c0_i32_0 = arith.constant 0 : i32
    %c0_i32_1 = arith.constant 0 : i32
    %c0_i32_2 = arith.constant 0 : i32
    return %c0_i32, %c0_i32_0, %c0_i32_1 : i32, i32, i32
  }
  func.func @transform_6(%arg0: i32) -> (i32, i32, i32) {
    %c0_i32 = arith.constant 0 : i32
    %c0_i32_0 = arith.constant 0 : i32
    %c0_i32_1 = arith.constant 0 : i32
    %c0_i32_2 = arith.constant 0 : i32
    return %c0_i32, %c0_i32_0, %c0_i32_1 : i32, i32, i32
  }
  func.func @transform_7(%arg0: i32) -> (i32, i32, i32) {
    %c0_i32 = arith.constant 0 : i32
    %c0_i32_0 = arith.constant 0 : i32
    %c0_i32_1 = arith.constant 0 : i32
    %c0_i32_2 = arith.constant 0 : i32
    return %c0_i32, %c0_i32_0, %c0_i32_1 : i32, i32, i32
  }
  func.func @transform_8(%arg0: i32) -> (i32, i32, i32) {
    %c0_i32 = arith.constant 0 : i32
    %c0_i32_0 = arith.constant 0 : i32
    %c0_i32_1 = arith.constant 0 : i32
    %c0_i32_2 = arith.constant 0 : i32
    return %c0_i32, %c0_i32_0, %c0_i32_1 : i32, i32, i32
  }
  func.func @transform_9(%arg0: i32) -> (i32, i32, i32) {
    %c0_i32 = arith.constant 0 : i32
    %c0_i32_0 = arith.constant 0 : i32
    %c0_i32_1 = arith.constant 0 : i32
    %c0_i32_2 = arith.constant 0 : i32
    return %c0_i32, %c0_i32_0, %c0_i32_1 : i32, i32, i32
  }
  func.func @transform_10(%arg0: i32) -> (i32, i32, i32) {
    %c0_i32 = arith.constant 0 : i32
    %c0_i32_0 = arith.constant 0 : i32
    %c0_i32_1 = arith.constant 0 : i32
    %c0_i32_2 = arith.constant 0 : i32
    return %c0_i32, %c0_i32_0, %c0_i32_1 : i32, i32, i32
  }
  func.func @transform_11(%arg0: i32) -> (i32, i32, i32) {
    %c0_i32 = arith.constant 0 : i32
    %c0_i32_0 = arith.constant 0 : i32
    %c0_i32_1 = arith.constant 0 : i32
    %c0_i32_2 = arith.constant 0 : i32
    return %c0_i32, %c0_i32_0, %c0_i32_1 : i32, i32, i32
  }
  func.func @transform_12(%arg0: i32) -> (i32, i32, i32) {
    %c0_i32 = arith.constant 0 : i32
    %c0_i32_0 = arith.constant 0 : i32
    %c0_i32_1 = arith.constant 0 : i32
    %c0_i32_2 = arith.constant 0 : i32
    return %c0_i32, %c0_i32_0, %c0_i32_1 : i32, i32, i32
  }
  func.func @transform_13(%arg0: i32) -> (i32, i32, i32) {
    %c0_i32 = arith.constant 0 : i32
    %c0_i32_0 = arith.constant 0 : i32
    %c0_i32_1 = arith.constant 0 : i32
    %c0_i32_2 = arith.constant 0 : i32
    return %c0_i32, %c0_i32_0, %c0_i32_1 : i32, i32, i32
  }
  func.func @transform_14(%arg0: i32) -> (i32, i32, i32) {
    %c0_i32 = arith.constant 0 : i32
    %c0_i32_0 = arith.constant 0 : i32
    %c0_i32_1 = arith.constant 0 : i32
    %c0_i32_2 = arith.constant 0 : i32
    return %c0_i32, %c0_i32_0, %c0_i32_1 : i32, i32, i32
  }
  func.func @transform_15(%arg0: i32) -> (i32, i32, i32) {
    %c0_i32 = arith.constant 0 : i32
    %c0_i32_0 = arith.constant 0 : i32
    %c0_i32_1 = arith.constant 0 : i32
    %c0_i32_2 = arith.constant 0 : i32
    return %c0_i32, %c0_i32_0, %c0_i32_1 : i32, i32, i32
  }
  func.func @transform_16(%arg0: i32) -> (i32, i32) {
    %c0_i32 = arith.constant 0 : i32
    %c0_i32_0 = arith.constant 0 : i32
    %c0_i32_1 = arith.constant 0 : i32
    return %c0_i32, %c0_i32_0 : i32, i32
  }
  func.func @transform_17(%arg0: i32) -> (i32, i32) {
    %c0_i32 = arith.constant 0 : i32
    %c0_i32_0 = arith.constant 0 : i32
    %c0_i32_1 = arith.constant 0 : i32
    return %c0_i32, %c0_i32_0 : i32, i32
  }
  func.func @transform_18(%arg0: i32) -> (i32, i32, i32) {
    %c0_i32 = arith.constant 0 : i32
    %c0_i32_0 = arith.constant 0 : i32
    %c0_i32_1 = arith.constant 0 : i32
    return %arg0, %c0_i32, %c0_i32_0 : i32, i32, i32
  }
}

</mosaic_0001>

<bundles_post_ra>
// kernel: tpu_custom_call.1
= control target key start
LH: loop header
LB: loop body
LE: loop exit
PB: predicated region body
PF: predicated region fallthrough
CT: control target
= control target key end

     0   :  { %s2633_s0 = inlined_call_operand.vmem [shape: f32[2,4,192], index: 0, kind: input, shape index: {}]   ;;  %s2634_s1 = inlined_call_operand.vmem [shape: f32[4,32], index: 1, kind: input, shape index: {}]   ;;  %s2635_s2 = inlined_call_operand.vmem [shape: f32[192,32], index: 2, kind: input, shape index: {}]   ;;  %s2636_s3 = inlined_call_operand.vmem [shape: f32[1,32], index: 3, kind: input, shape index: {}]   ;;  %s2637_s4 = inlined_call_operand.vmem [shape: f32[2,1,32], index: 4, kind: input, shape index: {}]   ;;  %s2638_s5 = inlined_call_operand.vmem [shape: f32[2,1,32], index: 5, kind: input, shape index: {}]   ;;  %s2639_s6 = inlined_call_operand.vmem [shape: f32[2,32,96], index: 6, kind: input, shape index: {}]   ;;  %s2640_s7 = inlined_call_operand.vmem [shape: f32[2,1,96], index: 7, kind: input, shape index: {}]   ;;  %s2641_s8 = inlined_call_operand.vmem [shape: f32[2,32,32], index: 8, kind: input, shape index: {}]   ;;  %s2642_s9 = inlined_call_operand.vmem [shape: f32[2,1,32], index: 9, kind: input, shape index: {}]   ;;  %s2643_s10 = inlined_call_operand.vmem [shape: f32[2,1,32], index: 10, kind: input, shape index: {}]   ;;  %s2644_s11 = inlined_call_operand.vmem [shape: f32[2,1,32], index: 11, kind: input, shape index: {}]   ;;  %s2645_s12 = inlined_call_operand.vmem [shape: f32[2,32,64], index: 12, kind: input, shape index: {}]   ;;  %s2646_s13 = inlined_call_operand.vmem [shape: f32[2,1,64], index: 13, kind: input, shape index: {}]   ;;  %s2647_s14 = inlined_call_operand.vmem [shape: f32[2,64,32], index: 14, kind: input, shape index: {}]   ;;  %s2648_s15 = inlined_call_operand.vmem [shape: f32[2,1,32], index: 15, kind: input, shape index: {}]   ;;  %s2649_s16 = inlined_call_operand.vmem [shape: f32[1,32], index: 16, kind: input, shape index: {}]   ;;  %s2650_s17 = inlined_call_operand.vmem [shape: f32[1,32], index: 17, kind: input, shape index: {}]   ;;  %s2651_s18 = inlined_call_operand.hbm [shape: f32[2,4,32], index: 18, kind: output, shape index: {}]  }
   0x1   :  { %2672 = sst [smem:[#allocation13_spill]] %s2633_s0 }
   0x2   :  { %2673 = sst [smem:[#allocation14_spill]] %s2634_s1 }
   0x3   :  { %2674 = sst [smem:[#allocation15_spill]] %s2635_s2 }
   0x4   :  { %2675 = sst [smem:[#allocation16_spill]] %s2636_s3 }
   0x5   :  { %2676 = sst [smem:[#allocation17_spill]] %s2650_s17 }
   0x6   :  { %2677 = sst [smem:[#allocation18_spill]] %s2651_s18 }
   0x7   :  { %23 = vsyncpa [#allocation4], 0 }
   0x8   :  { %25 = vsyncpa [#allocation4 + $0x1], 0  ;;  %s2132_s27 = smov 0   ;;  %s2134_s28 = smov 0  }
   0x9   :  { %s2136_s29 = smov 0   ;;  %s2138_s30 = smov 0  }
   0xa LB: > { %2678 = sst [smem:[#allocation6_spill]] %s2008_s27  ;;  %s2153_s0 = sadd.s32 4294967295, %s2020_s30   ;;  %s2020_s30 = sphi %s2138_s30, %s2707_s30   ;;  %s2016_s29 = sphi %s2136_s29, %s2709_s29   ;;  %s2012_s28 = sphi %s2134_s28, %s2711_s28   ;;  %s2008_s27 = sphi %s2132_s27, %s2710_s27  }
   0xb   : > { %2679 = sst [smem:[#allocation7_spill]] %s2016_s29  ;;  %s1756_s19 = sadd.s32 4294967294, %s2020_s30  }
   0xc   : > { %2680 = sst [smem:[#allocation8_spill]] %s2020_s30  ;;  %s2157_s1 = sadd.s32 1, %s2020_s30  }
   0xd   : > { %2681 = sst [smem:[#allocation9_spill]] %s2157_s1  ;;  %s421_s20 = sadd.s32 1, %s2016_s29 }
   0xe   : > { %s418_s21 = ssub.s32 %s2020_s30, %s2157_s1  ;;  %p431_p0 = scmp.ne.s32.totalorder %s2016_s29, %s2012_s28 }
   0xf   : > { %p419_p1 = scmp.eq.s32.totalorder %s418_s21, 0  ;;  %p432_p2 = scmp.eq.s32.totalorder %s2153_s0, 1 }
  0x10   : > { %p437_p3 = scmp.ne.s32.totalorder %s2012_s28, %s2008_s27  ;;  %p438_p4 = scmp.eq.s32.totalorder %s1756_s19, 1 }
  0x11   : > { %s2168_s22 = scalar_select %p419_p1, %s2016_s29, %s421_s20  }
  0x12   : > { %p2170_p5 = por %p432_p2, %p431_p0  ;;  %p2174_p6 = por %p438_p4, %p437_p3 }
  0x13   : > { %2682 = sst [smem:[#allocation10_spill]] %s2168_s22  ;;  %p1759_p7 = scmp.ge.s32.totalorder %s2020_s30, 1 }
  0x14   : > { %s2683_s2 = scalar_select %p2170_p5, 1, 0 }
  0x15   : > { %s2685_s23 = scalar_select %p2174_p6, 1, 0 }
  0x16   : > { %2684 = sst [smem:[#allocation11_spill]] %s2683_s2  ;;  %p515_p8 = scmp.lt.s32.totalorder %s2020_s30, 3 }
  0x17   : > { %2686 = sst [smem:[#allocation12_spill]] %s2685_s23 }
  0x18   : > { %p516_p9 = pnand %p1759_p7, %p515_p8 }
  0x19   : > { %s2687_s26 = sld [smem:[#allocation15_spill]] (!%p516_p9)  ;;  %p569_p10 = scmp.lt.s32.totalorder (!%p516_p9), %s2153_s0, 1 }
  0x1a   : > { %519 = sbr.rel (%p516_p9) target bundleno = 4954 (0x135a), region = 92  ;;  %s2688_s2 = sld [smem:[#allocation13_spill]] (!%p516_p9) }
  0x1b   : > { %s2689_s3 = sld [smem:[#allocation16_spill]] (!%p516_p9)  ;;  %s2024_s22 = smov (!%p516_p9), 120  }
  0x1c   : > { %s2690_s18 = sld [smem:[#allocation14_spill]] (!%p516_p9)  ;;  %s2025_s21 = smov (!%p516_p9), 96  }
  0x1d   : > { %s2668_s23 = smov (!%p516_p9), 88   ;;  %s2028_s24 = smov (!%p516_p9), 80  }
  0x1e   : > { %s2671_s25 = smov (!%p516_p9), 72   ;;  %s2667_s27 = smov (!%p516_p9), 112  }
  0x1f   : > { %v590_v0 = vld [vmem:[%s2687_s26 + $0x78] sm:$0xff]  ;;  %v589_v1 = vld [vmem:[%s2687_s26 + $0x70] sm:$0xff]  ;;  %v588_v2 = vld [vmem:[%s2687_s26 + $0x68] sm:$0xff]  ;;  %s570_s29 = scalar_select %p569_p10, %s2153_s0, 1  ;;  %vm608_vm0 = vcmask 523264   ;;  %vm655_vm1 = vcmask 257024  }
  0x20   : > { %611 = vmatpush.msra.mxu0 %v590_v0  ;;  %v598_v3 = vld [vmem:[%s2687_s26 + $0xb8] sm:$0xff]  ;;  %v587_v4 = vld [vmem:[%s2687_s26 + $0x60] sm:$0xff]  ;;  %v597_v5 = vld [vmem:[%s2687_s26 + $0xb0] sm:$0xff]  ;;  %v2022_v35 = vmov 32.0   ;;  %vm701_vm6 = vcmask 261120   ;;  %vm728_vm7 = vcmask 64512  }
  0x21   : > { %639 = vmatpush.msra.mxu1 %v598_v3  ;;  %s1836_s20 = sshll.u32 %s570_s29, 3  ;;  %v596_v6 = vld [vmem:[%s2687_s26 + $0xa8] sm:$0xff]  ;;  %v586_v7 = vld [vmem:[%s2687_s26 + $0x58] sm:$0xff]  ;;  %v585_v8 = vld [vmem:[%s2687_s26 + $0x50] sm:$0xff]  ;;  %1910 = vrcp.f32 %v2022_v35  ;;  %vm771_vm8 = vcmask 1043456   ;;  %vm753_vm9 = vcmask 27648  }
  0x22   : > { %612 = vmatpush.msra.mxu0 %v589_v1  ;;  %s573_s1 = scalar_lea.vmem %s2688_s2, %s1836_s20  ;;  %v595_v9 = vld [vmem:[%s2687_s26 + $0xa0] sm:$0xff]  ;;  %v584_v11 = vld [vmem:[%s2687_s26 + $0x48] sm:$0xff]  ;;  %v594_v12 = vld [vmem:[%s2687_s26 + $0x98] sm:$0xff]  ;;  %s2023_s20 = smov 64   ;;  %vm767_vm10 = vcmask 31744   ;;  %vm794_vm11 = vcmask 60416  }
  0x23   : > { %640 = vmatpush.msra.mxu1 %v597_v5  ;;  %v574_v10 = vld [vmem:[%s573_s1] sm:$0xff]  ;;  %v593_v13 = vld [vmem:[%s2687_s26 + $0x90] sm:$0xff]  ;;  %v592_v15 = vld [vmem:[%s2687_s26 + $0x88] sm:$0xff]  ;;  %s2665_s1 = smov 56   ;;  %s2666_s29 = smov 104   ;;  %vm866_vm12 = vcmask 126016  }
  0x24   : > { %613 = vmatpush.msra.mxu0 %v588_v2  ;;  %604 = vst [vmem:[#allocation1] ss:$2 sm:$0xff] %v574_v10  ;;  %v583_v14 = vld [vmem:[%s2687_s26 + $0x40] sm:$0xff]  ;;  %v582_v16 = vld [vmem:[%s2687_s26 + $0x38] sm:$0xff]  ;;  %v581_v18 = vld [vmem:[%s2687_s26 + $0x30] sm:$0xff]  ;;  %s2663_s30 = smov 48  }
  0x25   : > { %641 = vmatpush.msra.mxu1 %v596_v6  ;;  %v591_v17 = vld [vmem:[%s2687_s26 + $0x80] sm:$0xff]  ;;  %v580_v20 = vld [vmem:[%s2687_s26 + $0x28] sm:$0xff]  ;;  %v578_v22 = vld [vmem:[%s2687_s26 + $0x18] sm:$0xff]  ;;  %s2662_s19 = smov 8   ;;  %s2664_s17 = smov 40   ;;  %vm938_vm13 = vcmask 191616  }
  0x26   : > { %614 = vmatpush.msra.mxu0 %v587_v4  ;;  %v579_v21 = vld [vmem:[%s2687_s26 + $0x20] sm:$0xff]  ;;  %v577_v23 = vld [vmem:[%s2687_s26 + $0x10] sm:$0xff]  ;;  %v576_v24 = vld [vmem:[%s2687_s26 + $0x8] sm:$0xff]  ;;  %s2669_s2 = smov 16   ;;  %vm1010_vm14 = vcmask 257216  }
  0x27   : > { %642 = vmatpush.msra.mxu1 %v595_v9  ;;  %v575_v25 = vld [vmem:[%s2687_s26] sm:$0xff]  ;;  %v1911_v36 = vpop.eup %1910  ;;  %v696_v47 = vld [vmem:[%s2639_s6 + $0x18] sm:$0xff]  ;;  %v695_v48 = vld [vmem:[%s2639_s6 + $0x10] sm:$0xff] }
  0x28   : > { %615 = vmatpush.msra.mxu0 %v586_v7  ;;  %v1891_v27 = vld [vmem:[%s2689_s3] ss:$0 sm:$0xff]  ;;  %v660_v37 = vmul.f32 32.0, %v1911_v36  ;;  %vm664_vm2 = vweird.f32 %v1911_v36  ;;  %717 = vmatpush.msra.mxu2 %v696_v47  ;;  %v694_v49 = vld [vmem:[%s2639_s6 + $0x8] sm:$0xff] }
  0x29   : > { %643 = vmatpush.msra.mxu1 %v594_v12  ;;  %v651_v31 = vld [vmem:[%s2690_s18] sm:$0xf]  ;;  %s2670_s18 = smov 24  }
  0x2a   : > { %616 = vmatpush.msra.mxu0 %v585_v8  ;;  %v661_v38 = vsub.f32 1.0, %v660_v37  ;;  %718 = vmatpush.msra.mxu2 %v695_v48  ;;  %v693_v50 = vld [vmem:[%s2639_s6] sm:$0xff] }
  0x2b   : > { %644 = vmatpush.msra.mxu1 %v593_v13  ;;  %v606_v19 = vld.sshfl [vmem:[#allocation1 + $0x8] sm:$0xff pattern:$0x75316420]  ;;  %v605_v26 = vld.sshfl [vmem:[#allocation1] sm:$0xff pattern:$0x75316420] }
  0x2c   : > { %617 = vmatpush.msra.mxu0 %v584_v11  ;;  %v662_v39 = vmul.f32 %v1911_v36, %v661_v38  ;;  %719 = vmatpush.msra.mxu2 %v694_v49  ;;  %v1892_v60 = vld [vmem:[%s2637_s4] ss:$0 sm:$0xff] }
  0x2d   : > { %645 = vmatpush.msra.mxu1 %v592_v15  ;;  %v1893_v63 = vld [vmem:[%s2638_s5] ss:$0 sm:$0xff] }
  0x2e   : > { %618 = vmatpush.msra.mxu0 %v583_v14  ;;  %v663_v40 = vadd.f32 %v1911_v36, %v662_v39  ;;  %720 = vmatpush.msra.mxu2 %v693_v50  ;;  %v1894_v2 = vld [vmem:[%s2640_s7] ss:$0 sm:$0xff] }
  0x2f   : > { %646 = vmatpush.msra.mxu1 %v591_v17 }
  0x30   : > { %619 = vmatpush.msra.mxu0 %v582_v16  ;;  %1763 = vmatmul.msk.f32.vlgmr.msra.gmra.mxu1 %vm608_vm0, %v606_v19  ;;  %v2268_v41 = vsel %vm664_vm2, %v1911_v36, %v663_v40 }
  0x32   : > { %620 = vmatpush.msra.mxu0 %v581_v18 }
  0x34   : > { %621 = vmatpush.msra.mxu0 %v580_v20 }
  0x36   : > { %622 = vmatpush.msra.mxu0 %v579_v21 }
  0x38   : > { %623 = vmatpush.msra.mxu0 %v578_v22 }
  0x3a   : > { %624 = vmatpush.msra.mxu0 %v577_v23 }
  0x3c   : > { %625 = vmatpush.msra.mxu0 %v576_v24 }
  0x3e   : > { %626 = vmatpush.msra.mxu0 %v575_v25 }
  0x3f   : > { %627 = vmatmul.f32.vlgmr.msra.gmra.mxu0 %v605_v26 }
  0xad   : > { %v648_v29 = vpop.f32.mrf.mxu1 }
  0xbc   : > { %v628_v28 = vpop.f32.mrf.mxu0 }
  0xbd   : > { %v629_v30 = vadd.f32 %v1891_v27, %v628_v28 }
  0xbf   : > { %v649_v32 = vadd.f32 %v648_v29, %v629_v30 }
  0xc1   : > { %v2264_v33 = vadd.f32 %v651_v31, %v649_v32 }
  0xc3   : > { %v656_v34 = vsel %vm655_vm1, %v2264_v33, 0.0 }
  0xc4   : > { %657 = vadd.xlane.f32.xlu0 %v656_v34 }
 0x137   : > { %v658_v42 = vpop.xlane.xlu0 %657 }
 0x138   : > { %v666_v43 = vmul.f32 %v2268_v41, %v658_v42 }
 0x13a   : > { %v667_v44 = vsub.f32 %v2264_v33, %v666_v43 }
 0x13c   : > { %v668_v45 = vmul.f32 %v667_v44, %v667_v44 }
 0x13e   : > { %v669_v46 = vsel %vm655_vm1, %v668_v45, 0.0 }
 0x13f   : > { %670 = vadd.xlane.f32.xlu0 %v669_v46 }
 0x1b2   : > { %v671_v51 = vpop.xlane.xlu0 %670 }
 0x1b3   : > { %v672_v52 = vmul.f32 %v671_v51, %v2268_v41 }
 0x1b5   : > { %v673_v53 = vadd.f32 1e-06, %v672_v52 }
 0x1b7   : > { %1912 = vrsqrt.f32 %v673_v53  ;;  %vm680_vm4 = vweird.f32 %v673_v53 }
 0x1bd   : > { %v1913_v54 = vpop.eup %1912 }
 0x1be   : > { %v675_v55 = vmul.f32 %v1913_v54, %v673_v53  ;;  %vm681_vm3 = vweird.f32 %v1913_v54 }
 0x1bf   : > { %vm682_vm5 = vmor %vm680_vm4, %vm681_vm3 }
 0x1c0   : > { %v676_v56 = vmul.f32 %v1913_v54, %v675_v55 }
 0x1c2   : > { %v677_v57 = vmul.f32 0.5, %v676_v56 }
 0x1c4   : > { %v678_v58 = vsub.f32 1.5, %v677_v57 }
 0x1c6   : > { %v679_v59 = vmul.f32 %v1913_v54, %v678_v58 }
 0x1c8   : > { %v683_v61 = vsel %vm682_vm5, %v1913_v54, %v679_v59 }
 0x1c9   : > { %v684_v62 = vmul.f32 %v683_v61, %v667_v44 }
 0x1cb   : > { %v688_v0 = vmul.f32 %v1892_v60, %v684_v62 }
 0x1cd   : > { %v692_v1 = vadd.f32 %v1893_v63, %v688_v0  ;;  %v1016_v63 = vld [vmem:[%s2641_s8 + $0x18] sm:$0xff]  ;;  %v1015_v0 = vld [vmem:[%s2641_s8 + $0x10] sm:$0xff] }
 0x1cf   : > { %1764 = vmatmul.msk.f32.vlgmr.msra.gmra.mxu2 %vm701_vm6, %v692_v1  ;;  %v1014_v1 = vld [vmem:[%s2641_s8 + $0x8] sm:$0xff] }
 0x252   : > { %v722_v3 = vpop.f32.mrf.mxu2 }
 0x253   : > { %v2296_v4 = vadd.f32 %v1894_v2, %v722_v3  ;;  %v1013_v2 = vld [vmem:[%s2641_s8] sm:$0xff] }
 0x255   : > { %765 = vrot.lane.b32.xlu0 %v2296_v4, %s2023_s20  ;;  %796 = vrot.lane.b32.xlu2 %v2296_v4, %s2024_s22 }
 0x256   : > { %726 = vrot.lane.b32.xlu1 %v2296_v4, %s2025_s21 }
 0x25d   : > { %835 = vrot.lane.b32.xlu0 %v2296_v4, %s2665_s1  ;;  %s1833_s1 = sshll.u32 %s2153_s0, 2 }
 0x25e   : > { %798 = vrot.lane.b32.xlu1 %v2296_v4, %s2668_s23  ;;  %s2691_s23 = smov 72  }
 0x2af   : > { %v797_v9 = vpop.permute.xlu2 %796 }
 0x2c7   : > { %v766_v5 = vpop.permute.xlu0 %765 }
 0x2c8   : > { %v727_v6 = vpop.permute.xlu1 %726 }
 0x2c9   : > { %1765 = vmatpush.xpose.msk.msra.mxu3 %vm728_vm7, %v727_v6  ;;  %v1895_v6 = vld [vmem:[%s2642_s9] ss:$0 sm:$0xff] }
 0x2cc   : > { %1766 = vmatmul.msk.f32.vlgmr.msra.gmra.mxu3 %vm728_vm7, %v2296_v4 }
 0x2cd   : > { %1767 = vmatpush.msk.msrb.mxu3 %vm771_vm8, %v766_v5 }
 0x2cf   : > { %v836_v7 = vpop.permute.xlu0 %835 }
 0x2d0   : > { %v799_v8 = vpop.permute.xlu1 %798  ;;  %1771 = vmatpush.msk.msra.mxu3 %vm771_vm8, %v836_v7 }
 0x2d1   : > { %1769 = vmatpush.xpose.msk.msrb.mxu2 %vm728_vm7, %v799_v8 }
 0x2d4   : > { %1770 = vmatmul.msk.f32.vlgmr.msrb.gmra.mxu2 %vm728_vm7, %v797_v9 }
 0x34f   : > { %v750_v10 = vpop.f32.mrf.mxu3 }
 0x350   : > { %v754_v11 = vsel %vm753_vm9, %v750_v10, -inf }
 0x351   : > { %755 = vmax.xlane.f32.xlu2 %v754_v11 }
 0x357   : > { %v821_v12 = vpop.f32.mrf.mxu2 }
 0x358   : > { %v824_v13 = vsel %vm753_vm9, %v821_v12, -inf }
 0x359   : > { %825 = vmax.xlane.f32.xlu0 %v824_v13 }
 0x369   : > { %870 = vrot.lane.b32.xlu2 %v2296_v4, %s2028_s24 }
 0x36d   : > { %942 = vrot.lane.b32.xlu0 %v2296_v4, %s2671_s25  ;;  %s2698_s25 = smov 8  }
 0x3c4   : > { %v756_v14 = vpop.xlane.xlu2 %755 }
 0x3c5   : > { %v757_v15 = vsub.f32 %v750_v10, %v756_v14 }
 0x3c7   : > { %v758_v16 = vmul.f32 1.442695, %v757_v15 }
 0x3c9   : > { %1914 = vpow2.f32 %v758_v16  ;;  %v1080_v16 = vld [vmem:[%s2645_s12 + $0x18] sm:$0xff] }
 0x3cc   : > { %v871_v17 = vpop.permute.xlu2 %870  ;;  %v826_v18 = vpop.xlane.xlu0 %825 }
 0x3cd   : > { %v827_v19 = vsub.f32 %v821_v12, %v826_v18  ;;  %1773 = vmatpush.xpose.msk.msra.mxu2 %vm728_vm7, %v871_v17  ;;  %v1078_v17 = vld [vmem:[%s2645_s12 + $0x8] sm:$0xff]  ;;  %v1077_v18 = vld [vmem:[%s2645_s12] sm:$0xff] }
 0x3cf   : > { %v1915_v20 = vpop.eup %1914  ;;  %v828_v21 = vmul.f32 1.442695, %v827_v19 }
 0x3d0   : > { %v760_v22 = vsel %vm753_vm9, %v1915_v20, 0.0 }
 0x3d1   : > { %1916 = vpow2.f32 %v828_v21  ;;  %761 = vadd.xlane.f32.xlu1 %v760_v22 }
 0x3d7   : > { %v1917_v23 = vpop.eup %1916 }
 0x3d8   : > { %v830_v24 = vsel %vm753_vm9, %v1917_v23, 0.0 }
 0x3d9   : > { %831 = vadd.xlane.f32.xlu0 %v830_v24 }
 0x3df   : > { %v943_v25 = vpop.permute.xlu0 %942 }
 0x3ea   : > { %868 = vrot.lane.b32.xlu1 %v2296_v4, %s2667_s27 }
 0x3ed   : > { %940 = vrot.lane.b32.xlu0 %v2296_v4, %s2666_s29  ;;  %s2696_s29 = smov 40  }
 0x444   : > { %v762_v26 = vpop.xlane.xlu1 %761 }
 0x445   : > { %1918 = vrcp.f32 %v762_v26 }
 0x44b   : > { %v1919_v27 = vpop.eup %1918 }
 0x44c   : > { %v832_v28 = vpop.xlane.xlu0 %831  ;;  %v764_v29 = vmul.f32 %v1919_v27, %v1915_v20 }
 0x44d   : > { %1920 = vrcp.f32 %v832_v28  ;;  %v1896_v28 = vld [vmem:[%s2643_s10] ss:$0 sm:$0xff] }
 0x44e   : > { %1768 = vmatmul.msk.f32.vlgmr.msrb.gmra.mxu3 %vm767_vm10, %v764_v29 }
 0x44f   : > { %1777 = vmatpush.xpose.msk.msrb.mxu3 %vm728_vm7, %v943_v25 }
 0x453   : > { %v1921_v30 = vpop.eup %1920 }
 0x454   : > { %v834_v31 = vmul.f32 %v1921_v30, %v1917_v23 }
 0x456   : > { %1772 = vmatmul.msk.f32.vlgmr.msra.gmra.mxu3 %vm767_vm10, %v834_v31  ;;  %v1897_v31 = vld [vmem:[%s2644_s11] ss:$0 sm:$0xff] }
 0x457   : > { %1100 = vmatpush.msra.mxu3 %v1080_v16 }
 0x45c   : > { %v869_v32 = vpop.permute.xlu1 %868 }
 0x45d   : > { %1774 = vmatmul.msk.f32.vlgmr.msra.gmra.mxu2 %vm728_vm7, %v869_v32 }
 0x45f   : > { %v941_v34 = vpop.permute.xlu0 %940 }
 0x460   : > { %1778 = vmatmul.msk.f32.vlgmr.msrb.gmra.mxu3 %vm728_vm7, %v941_v34 }
 0x4d1   : > { %v791_v35 = vpop.f32.mrf.mxu3 }
 0x4d2   : > { %795 = vst.msk [vmem:[#allocation2] sm:$0xf] %vm794_vm11, %v791_v35  ;;  %v1124_v35 = vld [vmem:[%s2647_s14 + $0x38] sm:$0xff] }
 0x4d3   : > { %1140 = vmatpush.msrb.mxu0 %v1124_v35 }
 0x4d9   : > { %v859_v36 = vpop.f32.mrf.mxu3 }
 0x4e0   : > { %v893_v37 = vpop.f32.mrf.mxu2 }
 0x4e1   : > { %v896_v38 = vsel %vm753_vm9, %v893_v37, -inf }
 0x4e2   : > { %897 = vmax.xlane.f32.xlu2 %v896_v38  ;;  %v1121_v38 = vld [vmem:[%s2647_s14 + $0x20] sm:$0xff] }
 0x4e3   : > { %v965_v39 = vpop.f32.mrf.mxu3 }
 0x4e4   : > { %v968_v40 = vsel %vm753_vm9, %v965_v39, -inf }
 0x4e5   : > { %969 = vmax.xlane.f32.xlu0 %v968_v40  ;;  %v1119_v40 = vld [vmem:[%s2647_s14 + $0x10] sm:$0xff] }
 0x4f9   : > { %907 = vrot.lane.b32.xlu0 %v2296_v4, %s2663_s30  ;;  %s2697_s30 = smov 48  }
 0x555   : > { %v898_v42 = vpop.xlane.xlu2 %897 }
 0x556   : > { %v899_v43 = vsub.f32 %v893_v37, %v898_v42  ;;  %v1122_v37 = vld [vmem:[%s2647_s14 + $0x28] sm:$0xff] }
 0x557   : > { %v1118_v42 = vld [vmem:[%s2647_s14 + $0x8] sm:$0xff] }
 0x558   : > { %v900_v44 = vmul.f32 1.442695, %v899_v43  ;;  %v970_v45 = vpop.xlane.xlu0 %969  ;;  %v1117_v43 = vld [vmem:[%s2647_s14] sm:$0xff] }
 0x559   : > { %v971_v46 = vsub.f32 %v965_v39, %v970_v45  ;;  %v1120_v39 = vld [vmem:[%s2647_s14 + $0x18] sm:$0xff] }
 0x55a   : > { %1922 = vpow2.f32 %v900_v44  ;;  %v1898_v44 = vld [vmem:[%s2646_s13] ss:$0 sm:$0xff] }
 0x55b   : > { %v972_v47 = vmul.f32 1.442695, %v971_v46 }
 0x55d   : > { %1924 = vpow2.f32 %v972_v47 }
 0x560   : > { %v1923_v48 = vpop.eup %1922 }
 0x561   : > { %v902_v49 = vsel %vm753_vm9, %v1923_v48, 0.0 }
 0x562   : > { %903 = vadd.xlane.f32.xlu1 %v902_v49 }
 0x563   : > { %v1925_v50 = vpop.eup %1924 }
 0x564   : > { %v974_v51 = vsel %vm753_vm9, %v1925_v50, 0.0 }
 0x565   : > { %975 = vadd.xlane.f32.xlu2 %v974_v51 }
 0x56b   : > { %v908_v52 = vpop.permute.xlu0 %907 }
 0x56c   : > { %1775 = vmatpush.msk.msrb.mxu2 %vm771_vm8, %v908_v52 }
 0x56e   : > { %1036 = vmatpush.msra.mxu2 %v1016_v63 }
 0x570   : > { %1037 = vmatpush.msra.mxu2 %v1015_v0 }
 0x572   : > { %1038 = vmatpush.msra.mxu2 %v1014_v1 }
 0x574   : > { %1039 = vmatpush.msra.mxu2 %v1013_v2  ;;  %v1789_v2 = vld [vmem:[%s2639_s6 + $0x38] sm:$0xff] }
 0x57b   : > { %863 = vrot.lane.b32.xlu1 %v859_v36, %s2662_s19  ;;  %v1123_v36 = vld [vmem:[%s2647_s14 + $0x30] sm:$0xff]  ;;  %s2700_s19 = smov 16  }
 0x57c   : > { %1141 = vmatpush.msrb.mxu0 %v1123_v36 }
 0x57d   : > { %979 = vrot.lane.b32.xlu2 %v2296_v4, %s2664_s17  ;;  %s566_s17 = sand.u32 1, %s2012_s28  }
 0x57e   : > { %1142 = vmatpush.msrb.mxu0 %v1122_v37  ;;  %s1682_s27 = scalar_lea.sflag [#allocation4], %s566_s17 }
 0x580   : > { %1143 = vmatpush.msrb.mxu0 %v1121_v38 }
 0x582   : > { %1144 = vmatpush.msrb.mxu0 %v1120_v39 }
 0x584   : > { %1145 = vmatpush.msrb.mxu0 %v1119_v40 }
 0x586   : > { %1146 = vmatpush.msrb.mxu0 %v1118_v42 }
 0x588   : > { %1147 = vmatpush.msrb.mxu0 %v1117_v43 }
 0x5d5   : > { %v904_v53 = vpop.xlane.xlu1 %903 }
 0x5d6   : > { %1926 = vrcp.f32 %v904_v53 }
 0x5d8   : > { %v976_v54 = vpop.xlane.xlu2 %975 }
 0x5d9   : > { %1928 = vrcp.f32 %v976_v54 }
 0x5dc   : > { %v1927_v55 = vpop.eup %1926 }
 0x5dd   : > { %v906_v56 = vmul.f32 %v1927_v55, %v1923_v48 }
 0x5df   : > { %v1929_v57 = vpop.eup %1928  ;;  %1776 = vmatmul.msk.f32.vlgmr.msrb.gmra.mxu2 %vm767_vm10, %v906_v56  ;;  %v1899_v56 = vld [vmem:[%s2648_s15] ss:$0 sm:$0xff] }
 0x5e0   : > { %v980_v58 = vpop.permute.xlu2 %979  ;;  %v978_v59 = vmul.f32 %v1929_v57, %v1925_v50 }
 0x5e1   : > { %1779 = vmatpush.msk.msrb.mxu1 %vm771_vm8, %v980_v58 }
 0x5e2   : > { %1780 = vmatmul.msk.f32.vlgmr.msrb.gmra.mxu1 %vm767_vm10, %v978_v59 }
 0x5e3   : > { %1212 = vmatpush.msra.mxu1 %v1789_v2 }
 0x5ed   : > { %v864_v60 = vpop.permute.xlu1 %863 }
 0x5ee   : > { %867 = vst.msk [vmem:[#allocation2] sm:$0xf] %vm866_vm12, %v864_v60 }
 0x65f   : > { %v1003_v62 = vpop.f32.mrf.mxu1 }
 0x662   : > { %v931_v61 = vpop.f32.mrf.mxu2 }
 0x663   : > { %935 = vrot.lane.b32.xlu0 %v931_v61, %s2669_s2  ;;  %s1760_s2 = sshll.u32 %s566_s17, 2 }
 0x66b   : > { %1007 = vrot.lane.b32.xlu0 %v1003_v62, %s2670_s18  ;;  %s2699_s18 = smov 24  }
 0x6d5   : > { %v936_v3 = vpop.permute.xlu0 %935 }
 0x6d6   : > { %939 = vst.msk [vmem:[#allocation2] sm:$0xf] %vm938_vm13, %v936_v3  ;;  %v1788_v3 = vld [vmem:[%s2639_s6 + $0x30] sm:$0xff] }
 0x6d7   : > { %1213 = vmatpush.msra.mxu1 %v1788_v3 }
 0x6dd   : > { %v1008_v4 = vpop.permute.xlu0 %1007 }
 0x6de   : > { %1011 = vst.msk [vmem:[#allocation2] sm:$0xf] %vm1010_vm14, %v1008_v4  ;;  %v1787_v4 = vld [vmem:[%s2639_s6 + $0x28] sm:$0xff] }
 0x6df   : > { %1214 = vmatpush.msra.mxu1 %v1787_v4 }
 0x6e5   : > { %v1012_v5 = vld [vmem:[#allocation2] sm:$0xf] }
 0x6e6   : > { %1781 = vmatmul.msk.f32.vlgmr.msra.gmra.mxu2 %vm701_vm6, %v1012_v5  ;;  %v1786_v5 = vld [vmem:[%s2639_s6 + $0x20] sm:$0xff] }
 0x6e7   : > { %1215 = vmatpush.msra.mxu1 %v1786_v5 }
 0x769   : > { %v1041_v7 = vpop.f32.mrf.mxu2 }
 0x76a   : > { %v1042_v8 = vadd.f32 %v1895_v6, %v1041_v7 }
 0x76c   : > { %v2369_v9 = vadd.f32 %v1042_v8, %v2264_v33  ;;  %v1079_v33 = vld [vmem:[%s2645_s12 + $0x10] sm:$0xff] }
 0x76d   : > { %1101 = vmatpush.msra.mxu3 %v1079_v33 }
 0x76e   : > { %v1047_v10 = vsel %vm655_vm1, %v2369_v9, 0.0 }
 0x76f   : > { %1048 = vadd.xlane.f32.xlu2 %v1047_v10  ;;  %1102 = vmatpush.msra.mxu3 %v1078_v17  ;;  %v1901_v17 = vld [vmem:[%s2638_s5 + $0x1] ss:$0 sm:$0xff] }
 0x771   : > { %1103 = vmatpush.msra.mxu3 %v1077_v18 }
 0x7e2   : > { %v1049_v11 = vpop.xlane.xlu2 %1048 }
 0x7e3   : > { %v1050_v12 = vmul.f32 %v1049_v11, %v2268_v41 }
 0x7e5   : > { %v1051_v13 = vsub.f32 %v2369_v9, %v1050_v12 }
 0x7e7   : > { %v1052_v14 = vmul.f32 %v1051_v13, %v1051_v13 }
 0x7e9   : > { %v1053_v15 = vsel %vm655_vm1, %v1052_v14, 0.0 }
 0x7ea   : > { %1054 = vadd.xlane.f32.xlu1 %v1053_v15  ;;  %v1900_v15 = vld [vmem:[%s2637_s4 + $0x1] ss:$0 sm:$0xff] }
 0x85d   : > { %v1055_v19 = vpop.xlane.xlu1 %1054 }
 0x85e   : > { %v1056_v20 = vmul.f32 %v1055_v19, %v2268_v41 }
 0x860   : > { %v1057_v21 = vadd.f32 1e-06, %v1056_v20  ;;  %v1902_v20 = vld [vmem:[%s2640_s7 + $0x1] ss:$0 sm:$0xff] }
 0x862   : > { %1930 = vrsqrt.f32 %v1057_v21  ;;  %vm1064_vm2 = vweird.f32 %v1057_v21 }
 0x868   : > { %v1931_v22 = vpop.eup %1930 }
 0x869   : > { %v1059_v23 = vmul.f32 %v1931_v22, %v1057_v21  ;;  %vm1065_vm15 = vweird.f32 %v1931_v22 }
 0x86a   : > { %vm1066_vm3 = vmor %vm1064_vm2, %vm1065_vm15 }
 0x86b   : > { %v1060_v24 = vmul.f32 %v1931_v22, %v1059_v23 }
 0x86d   : > { %v1061_v25 = vmul.f32 0.5, %v1060_v24 }
 0x86f   : > { %v1062_v26 = vsub.f32 1.5, %v1061_v25 }
 0x871   : > { %v1063_v27 = vmul.f32 %v1931_v22, %v1062_v26 }
 0x873   : > { %v1067_v29 = vsel %vm1066_vm3, %v1931_v22, %v1063_v27 }
 0x874   : > { %v1068_v30 = vmul.f32 %v1067_v29, %v1051_v13 }
 0x876   : > { %v1072_v32 = vmul.f32 %v1896_v28, %v1068_v30 }
 0x878   : > { %v1076_v34 = vadd.f32 %v1897_v31, %v1072_v32 }
 0x87a   : > { %1782 = vmatmul.msk.f32.vlgmr.msra.gmra.mxu3 %vm701_vm6, %v1076_v34 }
 0x8fd   : > { %v1105_v45 = vpop.f32.mrf.mxu3 }
 0x8fe   : > { %v1106_v46 = vadd.f32 %v1898_v44, %v1105_v45 }
 0x900   : > { %v1109_v47 = vmul.f32 0.044715, %v1106_v46  ;;  %v1108_v53 = vmul.f32 0.5, %v1106_v46 }
 0x902   : > { %v1110_v48 = vmul.f32 %v1109_v47, %v1106_v46 }
 0x904   : > { %v1111_v49 = vmul.f32 %v1110_v48, %v1106_v46 }
 0x906   : > { %v1112_v50 = vadd.f32 %v1111_v49, %v1106_v46 }
 0x908   : > { %v1113_v51 = vmul.f32 0.7978846, %v1112_v50 }
 0x90a   : > { %1932 = vtanh.f32 %v1113_v51 }
 0x910   : > { %v1933_v52 = vpop.eup %1932 }
 0x911   : > { %v1115_v54 = vadd.f32 1.0, %v1933_v52 }
 0x913   : > { %v1116_v55 = vmul.f32 %v1115_v54, %v1108_v53 }
 0x915   : > { %1783 = vmatmul.msk.f32.vlgmr.msrb.gmra.mxu0 %vm608_vm0, %v1116_v55 }
 0x992   : > { %v1149_v57 = vpop.f32.mrf.mxu0 }
 0x993   : > { %v1150_v58 = vadd.f32 %v1899_v56, %v1149_v57 }
 0x995   : > { %v2428_v59 = vadd.f32 %v1150_v58, %v2369_v9 }
 0x997   : > { %v1157_v60 = vsel %vm655_vm1, %v2428_v59, 0.0 }
 0x998   : > { %1158 = vadd.xlane.f32.xlu0 %v1157_v60 }
 0xa0b   : > { %v1159_v61 = vpop.xlane.xlu0 %1158 }
 0xa0c   : > { %v1160_v62 = vmul.f32 %v1159_v61, %v2268_v41 }
 0xa0e   : > { %v1161_v63 = vsub.f32 %v2428_v59, %v1160_v62 }
 0xa10   : > { %v1162_v0 = vmul.f32 %v1161_v63, %v1161_v63 }
 0xa12   : > { %v1163_v1 = vsel %vm655_vm1, %v1162_v0, 0.0 }
 0xa13   : > { %1164 = vadd.xlane.f32.xlu2 %v1163_v1 }
 0xa86   : > { %v1165_v6 = vpop.xlane.xlu2 %1164 }
 0xa87   : > { %v1166_v7 = vmul.f32 %v1165_v6, %v2268_v41 }
 0xa89   : > { %v1167_v8 = vadd.f32 1e-06, %v1166_v7 }
 0xa8b   : > { %1934 = vrsqrt.f32 %v1167_v8  ;;  %vm1174_vm5 = vweird.f32 %v1167_v8 }
 0xa91   : > { %v1935_v9 = vpop.eup %1934 }
 0xa92   : > { %v1169_v10 = vmul.f32 %v1935_v9, %v1167_v8  ;;  %vm1175_vm4 = vweird.f32 %v1935_v9 }
 0xa93   : > { %vm1176_vm15 = vmor %vm1174_vm5, %vm1175_vm4 }
 0xa94   : > { %v1170_v11 = vmul.f32 %v1935_v9, %v1169_v10 }
 0xa96   : > { %v1171_v12 = vmul.f32 0.5, %v1170_v11 }
 0xa98   : > { %v1172_v13 = vsub.f32 1.5, %v1171_v12 }
 0xa9a   : > { %v1173_v14 = vmul.f32 %v1935_v9, %v1172_v13 }
 0xa9c   : > { %v1177_v16 = vsel %vm1176_vm15, %v1935_v9, %v1173_v14 }
 0xa9d   : > { %v1178_v33 = vmul.f32 %v1177_v16, %v1161_v63 }
 0xa9f   : > { %v1182_v18 = vmul.f32 %v1900_v15, %v1178_v33 }
 0xaa1   : > { %v1186_v19 = vadd.f32 %v1901_v17, %v1182_v18  ;;  %v1811_v17 = vld [vmem:[%s2641_s8 + $0x38] sm:$0xff]  ;;  %v1810_v18 = vld [vmem:[%s2641_s8 + $0x30] sm:$0xff] }
 0xaa3   : > { %1791 = vmatmul.msk.f32.vlgmr.msra.gmra.mxu1 %vm701_vm6, %v1186_v19  ;;  %v1809_v19 = vld [vmem:[%s2641_s8 + $0x28] sm:$0xff] }
 0xb20   : > { %v1217_v21 = vpop.f32.mrf.mxu1 }
 0xb21   : > { %v2458_v22 = vadd.f32 %v1902_v20, %v1217_v21  ;;  %v1808_v20 = vld [vmem:[%s2641_s8 + $0x20] sm:$0xff] }
 0xb23   : > { %1258 = vrot.lane.b32.xlu0 %v2458_v22, %s2023_s20  ;;  %1221 = vrot.lane.b32.xlu1 %v2458_v22, %s2025_s21  ;;  %s2692_s20 = smov 88   ;;  %s2694_s21 = smov 104  }
 0xb2b   : > { %1359 = vrot.lane.b32.xlu0 %v2458_v22, %s2028_s24  ;;  %1286 = vrot.lane.b32.xlu1 %v2458_v22, %s2024_s22  ;;  %s2693_s22 = smov 112   ;;  %s2695_s24 = smov 56  }
 0xb33   : > { %1430 = vrot.lane.b32.xlu1 %v2458_v22, %s2691_s23 }
 0xb95   : > { %v1259_v23 = vpop.permute.xlu0 %1258  ;;  %v1222_v24 = vpop.permute.xlu1 %1221 }
 0xb96   : > { %1792 = vmatpush.xpose.msk.msrb.mxu2 %vm728_vm7, %v1222_v24  ;;  %1794 = vmatpush.msk.msrb.mxu3 %vm771_vm8, %v1259_v23  ;;  %v1903_v24 = vld [vmem:[%s2642_s9 + $0x1] ss:$0 sm:$0xff] }
 0xb99   : > { %1793 = vmatmul.msk.f32.vlgmr.msrb.gmra.mxu2 %vm728_vm7, %v2458_v22 }
 0xb9d   : > { %v1360_v25 = vpop.permute.xlu0 %1359  ;;  %v1287_v28 = vpop.permute.xlu1 %1286 }
 0xb9e   : > { %1800 = vmatpush.xpose.msk.msra.mxu3 %vm728_vm7, %v1360_v25 }
 0xba5   : > { %v1431_v34 = vpop.permute.xlu1 %1430 }
 0xc1c   : > { %v1244_v26 = vpop.f32.mrf.mxu2 }
 0xc1d   : > { %v1247_v27 = vsel %vm753_vm9, %v1244_v26, -inf }
 0xc1e   : > { %1248 = vmax.xlane.f32.xlu2 %v1247_v27 }
 0xc36   : > { %1288 = vrot.lane.b32.xlu2 %v2458_v22, %s2692_s20 }
 0xc3e   : > { %1357 = vrot.lane.b32.xlu2 %v2458_v22, %s2693_s22 }
 0xc91   : > { %v1249_v29 = vpop.xlane.xlu2 %1248 }
 0xc92   : > { %v1250_v30 = vsub.f32 %v1244_v26, %v1249_v29 }
 0xc94   : > { %v1251_v31 = vmul.f32 1.442695, %v1250_v30 }
 0xc96   : > { %1936 = vpow2.f32 %v1251_v31 }
 0xc99   : > { %v1289_v32 = vpop.permute.xlu2 %1288 }
 0xc9a   : > { %1796 = vmatpush.xpose.msk.msrb.mxu1 %vm728_vm7, %v1289_v32 }
 0xc9c   : > { %v1937_v35 = vpop.eup %1936 }
 0xc9d   : > { %1797 = vmatmul.msk.f32.vlgmr.msrb.gmra.mxu1 %vm728_vm7, %v1287_v28  ;;  %v1253_v36 = vsel %vm753_vm9, %v1937_v35, 0.0 }
 0xc9e   : > { %1804 = vmatpush.xpose.msk.msra.mxu1 %vm728_vm7, %v1431_v34  ;;  %1254 = vadd.xlane.f32.xlu0 %v1253_v36  ;;  %v1817_v36 = vld [vmem:[%s2645_s12 + $0x28] sm:$0xff] }
 0xca1   : > { %v1358_v43 = vpop.permute.xlu2 %1357 }
 0xcb2   : > { %1428 = vrot.lane.b32.xlu0 %v2458_v22, %s2694_s21  ;;  %s2701_s21 = sld [smem:[#allocation18_spill]] }
 0xd11   : > { %v1255_v37 = vpop.xlane.xlu0 %1254 }
 0xd12   : > { %1938 = vrcp.f32 %v1255_v37  ;;  %v1816_v37 = vld [vmem:[%s2645_s12 + $0x20] sm:$0xff] }
 0xd18   : > { %v1939_v38 = vpop.eup %1938 }
 0xd19   : > { %v1257_v39 = vmul.f32 %v1939_v38, %v1937_v35  ;;  %v1819_v35 = vld [vmem:[%s2645_s12 + $0x38] sm:$0xff] }
 0xd1a   : > { %v1311_v40 = vpop.f32.mrf.mxu1 }
 0xd1b   : > { %1795 = vmatmul.msk.f32.vlgmr.msrb.gmra.mxu3 %vm767_vm10, %v1257_v39  ;;  %v1314_v42 = vsel %vm753_vm9, %v1311_v40, -inf }
 0xd1c   : > { %1315 = vmax.xlane.f32.xlu1 %v1314_v42  ;;  %1525 = vmatpush.msrb.mxu3 %v1811_v17 }
 0xd1e   : > { %1526 = vmatpush.msrb.mxu3 %v1810_v18 }
 0xd20   : > { %1527 = vmatpush.msrb.mxu3 %v1809_v19 }
 0xd22   : > { %1528 = vmatpush.msrb.mxu3 %v1808_v20 }
 0xd23   : > { %1801 = vmatmul.msk.f32.vlgmr.msra.gmra.mxu3 %vm728_vm7, %v1358_v43 }
 0xd24   : > { %v1429_v44 = vpop.permute.xlu0 %1428 }
 0xd25   : > { %1805 = vmatmul.msk.f32.vlgmr.msra.gmra.mxu1 %vm728_vm7, %v1429_v44 }
 0xd8f   : > { %v1316_v45 = vpop.xlane.xlu1 %1315 }
 0xd90   : > { %v1317_v46 = vsub.f32 %v1311_v40, %v1316_v45 }
 0xd92   : > { %v1318_v47 = vmul.f32 1.442695, %v1317_v46 }
 0xd94   : > { %1940 = vpow2.f32 %v1318_v47 }
 0xd9a   : > { %v1941_v48 = vpop.eup %1940 }
 0xd9b   : > { %v1320_v49 = vsel %vm753_vm9, %v1941_v48, 0.0 }
 0xd9c   : > { %1321 = vadd.xlane.f32.xlu1 %v1320_v49 }
 0xd9e   : > { %v1282_v50 = vpop.f32.mrf.mxu3 }
 0xd9f   : > { %1285 = vst.msk [vmem:[#allocation2] sm:$0xf] %vm794_vm11, %v1282_v50 }
 0xda2   : > { %v1453_v51 = vpop.f32.mrf.mxu1 }
 0xda3   : > { %v1456_v52 = vsel %vm753_vm9, %v1453_v51, -inf }
 0xda4   : > { %1457 = vmax.xlane.f32.xlu2 %v1456_v52 }
 0xda6   : > { %v1382_v53 = vpop.f32.mrf.mxu3 }
 0xda7   : > { %v1385_v54 = vsel %vm753_vm9, %v1382_v53, -inf }
 0xda8   : > { %1386 = vmax.xlane.f32.xlu0 %v1385_v54  ;;  %v1829_v54 = vld [vmem:[%s2647_s14 + $0x78] sm:$0xff] }
 0xda9   : > { %1635 = vmatpush.msrb.mxu1 %v1829_v54 }
 0xdbc   : > { %1325 = vrot.lane.b32.xlu0 %v2458_v22, %s2695_s24  ;;  %s1692_s24 = scalar_lea.hbm %s2701_s21, %s1833_s1 }
 0xdbd   : > { %s1696_s3 = sshll.u32 %s1692_s24, 4  ;;  %s1697_s3 = int_to_ptr.hbm [resolvable:$true] %s1696_s3 }
 0xdbe   : > { %s1972_s23 = sshra.s32 %s1697_s3, 4  ;;  %s1973_s23 = int_to_ptr.hbm [resolvable:$true] %s1972_s23 }
 0xdbf   : > { %s1974_s1 = scalar_lea.hbm %s1973_s23, 4  ;;  %p1979_p0 = scmp.lt.s32.totalorder %s1973_s23, %s2701_s21 }
 0xdc0   : > { %p1975_p11 = scmp.ne.s32.totalorder %s1973_s23, %s1974_s1 }
 0xdc2   : > { %p1976_p12 = pnand %p1975_p11, %p2170_p5 }
 0xdc4   : > { %p1977_p13 = pneg %p1976_p12 }
 0xe0f   : > { %v1322_v63 = vpop.xlane.xlu1 %1321 }
 0xe17   : > { %v1458_v55 = vpop.xlane.xlu2 %1457 }
 0xe18   : > { %v1459_v56 = vsub.f32 %v1453_v51, %v1458_v55  ;;  %v1905_v51 = vld [vmem:[%s2644_s11 + $0x1] ss:$0 sm:$0xff]  ;;  %v1828_v55 = vld [vmem:[%s2647_s14 + $0x70] sm:$0xff] }
 0xe19   : > { %1636 = vmatpush.msrb.mxu1 %v1828_v55 }
 0xe1a   : > { %v1460_v57 = vmul.f32 1.442695, %v1459_v56  ;;  %v1827_v56 = vld [vmem:[%s2647_s14 + $0x68] sm:$0xff] }
 0xe1b   : > { %v1387_v58 = vpop.xlane.xlu0 %1386  ;;  %1637 = vmatpush.msrb.mxu1 %v1827_v56 }
 0xe1c   : > { %1942 = vpow2.f32 %v1460_v57  ;;  %v1388_v60 = vsub.f32 %v1382_v53, %v1387_v58  ;;  %v1826_v57 = vld [vmem:[%s2647_s14 + $0x60] sm:$0xff]  ;;  %v1825_v58 = vld [vmem:[%s2647_s14 + $0x58] sm:$0xff] }
 0xe1d   : > { %1638 = vmatpush.msrb.mxu1 %v1826_v57 }
 0xe1e   : > { %v1389_v61 = vmul.f32 1.442695, %v1388_v60  ;;  %v1824_v60 = vld [vmem:[%s2647_s14 + $0x50] sm:$0xff] }
 0xe1f   : > { %1639 = vmatpush.msrb.mxu1 %v1825_v58 }
 0xe20   : > { %1944 = vpow2.f32 %v1389_v61  ;;  %v1823_v61 = vld [vmem:[%s2647_s14 + $0x48] sm:$0xff] }
 0xe21   : > { %1946 = vrcp.f32 %v1322_v63  ;;  %1640 = vmatpush.msrb.mxu1 %v1824_v60  ;;  %v1906_v63 = vld [vmem:[%s2646_s13 + $0x1] ss:$0 sm:$0xff] }
 0xe22   : > { %v1943_v62 = vpop.eup %1942 }
 0xe23   : > { %v1462_v0 = vsel %vm753_vm9, %v1943_v62, 0.0  ;;  %1641 = vmatpush.msrb.mxu1 %v1823_v61 }
 0xe24   : > { %1463 = vadd.xlane.f32.xlu2 %v1462_v0 }
 0xe26   : > { %v1945_v1 = vpop.eup %1944 }
 0xe27   : > { %v1391_v2 = vsel %vm753_vm9, %v1945_v1, 0.0  ;;  %v1947_v3 = vpop.eup %1946 }
 0xe28   : > { %1392 = vadd.xlane.f32.xlu1 %v1391_v2  ;;  %v1324_v4 = vmul.f32 %v1947_v3, %v1941_v48  ;;  %v1904_v48 = vld [vmem:[%s2643_s10 + $0x1] ss:$0 sm:$0xff] }
 0xe2e   : > { %v1326_v5 = vpop.permute.xlu0 %1325 }
 0xe2f   : > { %1798 = vmatpush.msk.msra.mxu2 %vm771_vm8, %v1326_v5 }
 0xe30   : > { %1799 = vmatmul.msk.f32.vlgmr.msra.gmra.mxu2 %vm767_vm10, %v1324_v4 }
 0xe3c   : > { %1467 = vrot.lane.b32.xlu2 %v2458_v22, %s2696_s29 }
 0xe41   : > { %1396 = vrot.lane.b32.xlu1 %v2458_v22, %s2697_s30 }
 0xe97   : > { %v1464_v6 = vpop.xlane.xlu2 %1463 }
 0xe98   : > { %1948 = vrcp.f32 %v1464_v6 }
 0xe9b   : > { %v1393_v10 = vpop.xlane.xlu1 %1392 }
 0xe9c   : > { %1950 = vrcp.f32 %v1393_v10 }
 0xe9e   : > { %v1949_v7 = vpop.eup %1948 }
 0xe9f   : > { %v1466_v8 = vmul.f32 %v1949_v7, %v1943_v62  ;;  %v1468_v9 = vpop.permute.xlu2 %1467  ;;  %v1822_v62 = vld [vmem:[%s2647_s14 + $0x40] sm:$0xff] }
 0xea0   : > { %1806 = vmatpush.msk.msrb.mxu2 %vm771_vm8, %v1468_v9  ;;  %1642 = vmatpush.msrb.mxu1 %v1822_v62 }
 0xea1   : > { %1807 = vmatmul.msk.f32.vlgmr.msrb.gmra.mxu2 %vm767_vm10, %v1466_v8 }
 0xea2   : > { %v1951_v11 = vpop.eup %1950 }
 0xea3   : > { %v1395_v12 = vmul.f32 %v1951_v11, %v1945_v1  ;;  %v1907_v11 = vld [vmem:[%s2648_s15 + $0x1] ss:$0 sm:$0xff] }
 0xeb3   : > { %v1349_v13 = vpop.f32.mrf.mxu2  ;;  %v1397_v14 = vpop.permute.xlu1 %1396 }
 0xeb4   : > { %1353 = vrot.lane.b32.xlu0 %v1349_v13, %s2698_s25  ;;  %1802 = vmatpush.msk.msra.mxu0 %vm771_vm8, %v1397_v14 }
 0xeb5   : > { %1803 = vmatmul.msk.f32.vlgmr.msra.gmra.mxu0 %vm767_vm10, %v1395_v12 }
 0xeb6   : > { %1593 = vmatpush.msrb.mxu0 %v1819_v35 }
 0xf24   : > { %v1491_v15 = vpop.f32.mrf.mxu2 }
 0xf25   : > { %1495 = vrot.lane.b32.xlu0 %v1491_v15, %s2699_s18  ;;  %s2703_s18 = sld [smem:[#allocation17_spill]] }
 0xf26   : > { %v1354_v16 = vpop.permute.xlu0 %1353 }
 0xf27   : > { %1356 = vst.msk [vmem:[#allocation2] sm:$0xf] %vm866_vm12, %v1354_v16 }
 0xf32   : > { %v1420_v33 = vpop.f32.mrf.mxu0 }
 0xf33   : > { %1424 = vrot.lane.b32.xlu2 %v1420_v33, %s2700_s19  ;;  %s568_s19 = scalar_lea.vmem [#allocation3], %s1760_s2  ;;  %s1978_s2 = scalar_lea.hbm %s2701_s21, 8 }
 0xf34   : > { %s1694_s0 = sshll.u32 %s568_s19, 4  ;;  %p1980_p1 = scmp.lt.s32.totalorder %s1978_s2, %s1974_s1  ;;  %s1695_s0 = int_to_ptr.vmem [resolvable:$true] %s1694_s0 }
 0xf36   : > { %p1981_p2 = por %p1980_p1, %p1979_p0 }
 0xf38   : > { %p1982_p3 = pnand %p1981_p2, %p1977_p13 }
 0xf8d   : > { %v1425_v21 = vpop.permute.xlu2 %1424 }
 0xf8e   : > { %1427 = vst.msk [vmem:[#allocation2] sm:$0xf] %vm938_vm13, %v1425_v21 }
 0xf97   : > { %v1496_v22 = vpop.permute.xlu0 %1495 }
 0xf98   : > { %1498 = vst.msk [vmem:[#allocation2] sm:$0xf] %vm1010_vm14, %v1496_v22 }
 0xf9f   : > { %v1499_v23 = vld [vmem:[#allocation2] sm:$0xf] }
 0xfa0   : > { %1813 = vmatmul.msk.f32.vlgmr.msrb.gmra.mxu3 %vm701_vm6, %v1499_v23 }
0x1023   : > { %v1530_v25 = vpop.f32.mrf.mxu3 }
0x1024   : > { %v1531_v26 = vadd.f32 %v1903_v24, %v1530_v25 }
0x1026   : > { %v2531_v27 = vadd.f32 %v1531_v26, %v2428_v59  ;;  %v1818_v59 = vld [vmem:[%s2645_s12 + $0x30] sm:$0xff] }
0x1027   : > { %1594 = vmatpush.msrb.mxu0 %v1818_v59 }
0x1028   : > { %v1538_v28 = vsel %vm655_vm1, %v2531_v27, 0.0 }
0x1029   : > { %1539 = vadd.xlane.f32.xlu1 %v1538_v28  ;;  %1595 = vmatpush.msrb.mxu0 %v1817_v36 }
0x102b   : > { %1596 = vmatpush.msrb.mxu0 %v1816_v37 }
0x109c   : > { %v1540_v29 = vpop.xlane.xlu1 %1539 }
0x109d   : > { %v1541_v30 = vmul.f32 %v1540_v29, %v2268_v41  ;;  %v1908_v29 = vld [vmem:[%s2649_s16] ss:$0 sm:$0xff] }
0x109f   : > { %v1542_v31 = vsub.f32 %v2531_v27, %v1541_v30 }
0x10a1   : > { %v1543_v32 = vmul.f32 %v1542_v31, %v1542_v31 }
0x10a3   : > { %v1544_v34 = vsel %vm655_vm1, %v1543_v32, 0.0 }
0x10a4   : > { %1545 = vadd.xlane.f32.xlu2 %v1544_v34 }
0x1117   : > { %v1546_v38 = vpop.xlane.xlu2 %1545 }
0x1118   : > { %v1547_v39 = vmul.f32 %v1546_v38, %v2268_v41 }
0x111a   : > { %v1548_v40 = vadd.f32 1e-06, %v1547_v39 }
0x111c   : > { %1952 = vrsqrt.f32 %v1548_v40  ;;  %vm1555_vm8 = vweird.f32 %v1548_v40 }
0x1122   : > { %v1953_v42 = vpop.eup %1952 }
0x1123   : > { %v1550_v43 = vmul.f32 %v1953_v42, %v1548_v40  ;;  %vm1556_vm7 = vweird.f32 %v1953_v42 }
0x1124   : > { %vm1557_vm9 = vmor %vm1555_vm8, %vm1556_vm7 }
0x1125   : > { %v1551_v44 = vmul.f32 %v1953_v42, %v1550_v43 }
0x1127   : > { %v1552_v45 = vmul.f32 0.5, %v1551_v44 }
0x1129   : > { %v1553_v46 = vsub.f32 1.5, %v1552_v45 }
0x112b   : > { %v1554_v47 = vmul.f32 %v1953_v42, %v1553_v46 }
0x112d   : > { %v1558_v49 = vsel %vm1557_vm9, %v1953_v42, %v1554_v47 }
0x112e   : > { %v1559_v50 = vmul.f32 %v1558_v49, %v1542_v31  ;;  %v1909_v31 = vld [vmem:[%s2703_s18] ss:$0 sm:$0xff] }
0x1130   : > { %v1563_v52 = vmul.f32 %v1904_v48, %v1559_v50 }
0x1132   : > { %v1567_v53 = vadd.f32 %v1905_v51, %v1563_v52 }
0x1134   : > { %1821 = vmatmul.msk.f32.vlgmr.msrb.gmra.mxu0 %vm701_vm6, %v1567_v53 }
0x11b1   : > { %v1598_v0 = vpop.f32.mrf.mxu0 }
0x11b2   : > { %v1599_v1 = vadd.f32 %v1906_v63, %v1598_v0 }
0x11b4   : > { %v1602_v2 = vmul.f32 0.044715, %v1599_v1  ;;  %v1601_v8 = vmul.f32 0.5, %v1599_v1 }
0x11b6   : > { %v1603_v3 = vmul.f32 %v1602_v2, %v1599_v1 }
0x11b8   : > { %v1604_v4 = vmul.f32 %v1603_v3, %v1599_v1 }
0x11ba   : > { %v1605_v5 = vadd.f32 %v1604_v4, %v1599_v1 }
0x11bc   : > { %v1606_v6 = vmul.f32 0.7978846, %v1605_v5 }
0x11be   : > { %1954 = vtanh.f32 %v1606_v6 }
0x11c4   : > { %v1955_v7 = vpop.eup %1954 }
0x11c5   : > { %v1608_v9 = vadd.f32 1.0, %v1955_v7 }
0x11c7   : > { %v1609_v10 = vmul.f32 %v1608_v9, %v1601_v8 }
0x11c9   : > { %1831 = vmatmul.msk.f32.vlgmr.msrb.gmra.mxu1 %vm608_vm0, %v1609_v10 }
0x1246   : > { %v1644_v12 = vpop.f32.mrf.mxu1 }
0x1247   : > { %v1645_v13 = vadd.f32 %v1907_v11, %v1644_v12 }
0x1249   : > { %v1647_v14 = vadd.f32 %v1645_v13, %v2531_v27 }
0x124b   : > { %v1650_v15 = vsel %vm655_vm1, %v1647_v14, 0.0 }
0x124c   : > { %1651 = vadd.xlane.f32.xlu0 %v1650_v15 }
0x12bf   : > { %v1652_v16 = vpop.xlane.xlu0 %1651 }
0x12c0   : > { %v1653_v33 = vmul.f32 %v1652_v16, %v2268_v41 }
0x12c2   : > { %v1654_v17 = vsub.f32 %v1647_v14, %v1653_v33 }
0x12c4   : > { %v1655_v18 = vmul.f32 %v1654_v17, %v1654_v17 }
0x12c6   : > { %v1656_v19 = vsel %vm655_vm1, %v1655_v18, 0.0 }
0x12c7   : > { %1657 = vadd.xlane.f32.xlu2 %v1656_v19 }
0x133a   : > { %v1658_v20 = vpop.xlane.xlu2 %1657 }
0x133b   : > { %v1659_v21 = vmul.f32 %v1658_v20, %v2268_v41 }
0x133d   : > { %v1660_v22 = vadd.f32 1e-06, %v1659_v21 }
0x133f   : > { %1956 = vrsqrt.f32 %v1660_v22  ;;  %vm1667_vm6 = vweird.f32 %v1660_v22 }
0x1345   : > { %v1957_v23 = vpop.eup %1956 }
0x1346   : > { %v1662_v24 = vmul.f32 %v1957_v23, %v1660_v22  ;;  %vm1668_vm0 = vweird.f32 %v1957_v23 }
0x1347   : > { %vm1669_vm10 = vmor %vm1667_vm6, %vm1668_vm0 }
0x1348   : > { %v1663_v25 = vmul.f32 %v1957_v23, %v1662_v24 }
0x134a   : > { %v1664_v26 = vmul.f32 0.5, %v1663_v25 }
0x134c   : > { %v1665_v27 = vsub.f32 1.5, %v1664_v26 }
0x134e   : > { %v1666_v28 = vmul.f32 %v1957_v23, %v1665_v27 }
0x1350   : > { %v1670_v41 = vsel %vm1669_vm10, %v1957_v23, %v1666_v28 }
0x1351   : > { %v1671_v30 = vmul.f32 %v1670_v41, %v1654_v17 }
0x1353   : > { %v1675_v32 = vmul.f32 %v1908_v29, %v1671_v30 }
0x1355   : > { %v1679_v34 = vadd.f32 %v1909_v31, %v1675_v32 }
0x1357   : > { %1680 = vst.msk [vmem:[%s568_s19] sm:$0xf] %vm655_vm1, %v1679_v34 }
0x1358   : > { %1985 = shalt.err (!%p1982_p3)
}
0x1359   : > { %1837 = dma.vmem_to_hbm [thread:$0]  (%p2170_p5), %s1695_s0, 64, %s1697_s3, %s1682_s27  }
0x135a PF: > { %s2704_s17 = sld [smem:[#allocation8_spill]] }
0x135b   : > { %s2705_s25 = sld [smem:[#allocation6_spill]] }
0x1360   : > { %p1843_p4 = scmp.ge.s32.totalorder %s2704_s17, 2 }
0x1361   : > { %s1708_s19 = sand.u32 1, %s2705_s25  }
0x1362   : > { %p1840_p7 = pnand %p1843_p4, %p2174_p6  ;;  %s1709_s20 = scalar_lea.sflag [#allocation4], %s1708_s19 }
0x1364   : > { %p1841_p8 = pneg %p1840_p7 }
0x1366   : > { %2003 = dma.done.wait (%p1841_p8), %s1709_s20, 64  }
0x1367   : > { %2005 = vsyncadd (%p1841_p8), %s1709_s20, 4294967232  ;;  %s2707_s30 = sld [smem:[#allocation9_spill]]  ;;  %s2710_s27 = smov %s2012_s28 }
0x1368   : > { %s2708_s23 = sld [smem:[#allocation7_spill]] }
0x1369   : > { %s2709_s29 = sld [smem:[#allocation10_spill]] }
0x136d   : > { %p28_p9 = scmp.ge.s32.totalorder %s2707_s30, 4  }
0x136e   : > { %s2711_s28 = smov %s2708_s23 }
0x136f   :  { %30 = sbr.rel (!%p28_p9) target bundleno = 10 (0xa), region = 139 }
0x1374   :  { %1715 = vsyncpa [#allocation4], 1 }
0x1375   :  { %1717 = vsyncpa [#allocation4 + $0x1], 1 }

</bundles_post_ra>
